<compile_context>
chip_gen: v7x
topology: tpu7x:2x2x1
jax: 0.10.0
libtpu: 0.0.40
codegen_flags: <defaults>
</compile_context>

<pallas_src>
import jax
import jax.numpy as jnp
from jax.experimental import pallas as pl
from jax.experimental.pallas import tpu as pltpu

# ------------------------- model dimensions (small, synthetic) -------------------------
B = 2          # batch
V = 8          # vocab / input channels
L = 16         # sequence length
K = 3          # conv kernel size (both conv layers)
C1 = 8         # conv1 out channels
C2 = 8         # conv2 out channels
H = 32         # encoder fc hidden
Z = 16         # latent dim
DD = 32        # decoder fc hidden (GRU input size)
HG = 32        # GRU hidden size
L1 = L - K + 1     # 14
L2 = L1 - K + 1    # 12

LANES = 128

# ---- row offsets inside the packed weight slab (all multiples of 8) ----
R_W1 = 0
R_W2 = R_W1 + K * V          # 24
R_WH = R_W2 + K * C1         # 48
R_WMULV = R_WH + L2 * C2     # 144
R_WD = R_WMULV + H           # 176
R_WIH = R_WD + Z             # 192
R_WHH = R_WIH + DD           # 224
R_WOUT = R_WHH + HG          # 256
W_ROWS = R_WOUT + HG         # 288


def _vae_kernel(x_ref, eps_ref, w_ref, b_ref, recon_ref, mulv_ref, hs_ref):
    f32 = jnp.float32

    # ---------------- hoisted parameter views (static sub-slices of the packed slabs) --------
    w1c = w_ref[R_W1:R_W1 + K * V, 0:C1]           # (24, 8)  im2col conv1 weight
    w2c = w_ref[R_W2:R_W2 + K * C1, 0:C2]          # (24, 8)  im2col conv2 weight
    whf = w_ref[R_WH:R_WH + L2 * C2, 0:H]          # (96, 32) flattened encoder FC
    wmulv = w_ref[R_WMULV:R_WMULV + H, 0:2 * Z]    # (32, 32) fused mu||logvar head
    wd = w_ref[R_WD:R_WD + Z, 0:DD]                # (16, 32)
    wih = w_ref[R_WIH:R_WIH + DD, 0:3 * HG]        # (32, 96)
    whh = w_ref[R_WHH:R_WHH + HG, 0:3 * HG]        # (32, 96)
    wout = w_ref[R_WOUT:R_WOUT + HG, 0:V]          # (32, 8)

    b1 = b_ref[0:1, 0:C1]
    b2 = b_ref[1:2, 0:C2]
    bh = b_ref[2:3, 0:H]
    bmulv = b_ref[3:4, 0:2 * Z]
    bd = b_ref[4:5, 0:DD]
    bih = b_ref[5:6, 0:3 * HG]
    bhh = b_ref[6:7, 0:3 * HG]
    bout = b_ref[7:8, 0:V]

    x = x_ref[...]                                 # (B, L, V)

    # ---------------- encoder: Conv1d(V->C1,K) + ReLU — one MXU push via im2col --------------
    xc = jnp.concatenate([x[:, k:k + L1, :] for k in range(K)], axis=-1)     # (B, L1, K*V)
    h1 = jnp.maximum(jnp.dot(xc, w1c, preferred_element_type=f32) + b1, 0.0)  # (B, L1, C1)

    # ---------------- encoder: Conv1d(C1->C2,K) + ReLU — one MXU push via im2col -------------
    h1c = jnp.concatenate([h1[:, k:k + L2, :] for k in range(K)], axis=-1)    # (B, L2, K*C1)
    h2 = jnp.maximum(jnp.dot(h1c, w2c, preferred_element_type=f32) + b2, 0.0)  # (B, L2, C2)

    # ---------------- encoder: flatten (L-major) + Linear + ReLU — one MXU push --------------
    h2f = jnp.concatenate([h2[:, t, :] for t in range(L2)], axis=-1)          # (B, L2*C2)
    h = jnp.maximum(jnp.dot(h2f, whf, preferred_element_type=f32) + bh, 0.0)  # (B, H)

    # ---------------- fused mu || logvar head (single matmul, packed output) ------------------
    mulv = jnp.dot(h, wmulv, preferred_element_type=f32) + bmulv              # (B, 2Z)
    mulv_ref[...] = mulv
    mu = mulv[:, 0:Z]
    logvar = mulv[:, Z:2 * Z]

    # ---------------- reparametrization (type2, training): z = mu + 0.01*eps*exp(0.5*logvar) --
    latent = mu + 0.01 * eps_ref[...] * jnp.exp(0.5 * logvar)                 # (B, Z)

    # ---------------- decoder: Linear + ReLU; GRU input projection done once ------------------
    d = jnp.maximum(jnp.dot(latent, wd, preferred_element_type=f32) + bd, 0.0)  # (B, DD)
    x_proj = jnp.dot(d, wih, preferred_element_type=f32) + bih                  # (B, 3*HG)
    x_rz = x_proj[:, 0:2 * HG]     # pre-sliced, loop-invariant
    x_n = x_proj[:, 2 * HG:3 * HG]

    # ---------------- GRU recurrence (PyTorch gate order r, z, n) — recurrence only -----------
    h_g = jnp.zeros((B, HG), f32)
    for t in range(L):
        gh = jnp.dot(h_g, whh, preferred_element_type=f32) + bhh              # (B, 3*HG)
        rz = jax.nn.sigmoid(x_rz + gh[:, 0:2 * HG])                           # fused r,z sigmoid
        r = rz[:, 0:HG]
        zg = rz[:, HG:2 * HG]
        n = jnp.tanh(x_n + r * gh[:, 2 * HG:3 * HG])
        h_g = (1.0 - zg) * n + zg * h_g
        hs_ref[t * B:(t + 1) * B, :] = h_g                                    # accumulate states

    # ---------------- hoisted output projection + softmax: one matmul, one softmax, one store -
    hs = hs_ref[...]                                                          # (L*B, HG)
    logits = jnp.dot(hs, wout, preferred_element_type=f32) + bout             # (L*B, V)
    m = jnp.max(logits, axis=-1, keepdims=True)
    e = jnp.exp(logits - m)
    recon_ref[...] = e / jnp.sum(e, axis=-1, keepdims=True)


@jax.jit
def molecular_vae_forward(x_ncl, eps, wslab, bslab):
    """x_ncl: (B, V, L) PyTorch Conv1d layout. Returns (x_recon (B,L,V), mu (B,Z), logvar (B,Z))."""
    x_nlc = jnp.transpose(x_ncl, (0, 2, 1)).astype(jnp.float32)   # -> (B, L, V)
    vmem = pl.BlockSpec(memory_space=pltpu.MemorySpace.VMEM)

    recon_flat, mulv = pl.pallas_call(
        _vae_kernel,
        out_shape=(jax.ShapeDtypeStruct((L * B, V), jnp.float32),   # rows: t*B + b
                   jax.ShapeDtypeStruct((B, 2 * Z), jnp.float32)),  # mu || logvar packed
        in_specs=[vmem, vmem, vmem, vmem],
        out_specs=(vmem, vmem),
        scratch_shapes=[pltpu.VMEM((L * B, HG), jnp.float32)],
    )(x_nlc, eps, wslab, bslab)

    x_recon = jnp.transpose(recon_flat.reshape(L, B, V), (1, 0, 2))  # (B, L, V)
    return x_recon, mulv[:, :Z], mulv[:, Z:]


def pack_params(p):
    """Pack all parameters into two lane-padded f32 slabs (done once, outside the kernel)."""
    def pad_lanes(a):
        return jnp.pad(a, ((0, 0), (0, LANES - a.shape[1])))

    w_blocks = [
        p["w1"].reshape(K * V, C1),            # im2col row order (k, c)
        p["w2"].reshape(K * C1, C2),
        p["wh"].reshape(L2 * C2, H),           # L-major flatten order (t, c)
        jnp.concatenate([p["wmu"], p["wlv"]], axis=1),
        p["wd"],
        p["wih"],
        p["whh"],
        p["wout"],
    ]
    wslab = jnp.concatenate([pad_lanes(w) for w in w_blocks], axis=0)   # (288, 128)
    assert wslab.shape == (W_ROWS, LANES)

    b_blocks = [
        p["b1"], p["b2"], p["bh"],
        jnp.concatenate([p["bmu"], p["blv"]], axis=1),
        p["bd"], p["bih"], p["bhh"], p["bout"],
    ]
    bslab = jnp.concatenate([pad_lanes(b) for b in b_blocks], axis=0)   # (8, 128)
    return wslab, bslab


def init_params(key):
    ks = jax.random.split(key, 16)
    s = 0.1
    return {
        "w1": s * jax.random.normal(ks[0], (K, V, C1), jnp.float32),
        "b1": jnp.zeros((1, C1), jnp.float32),
        "w2": s * jax.random.normal(ks[1], (K, C1, C2), jnp.float32),
        "b2": jnp.zeros((1, C2), jnp.float32),
        # encoder fc weight stored as (L2, C2, H) == flatten(L2*C2) x H reshaped
        "wh": s * jax.random.normal(ks[2], (L2, C2, H), jnp.float32),
        "bh": jnp.zeros((1, H), jnp.float32),
        "wmu": s * jax.random.normal(ks[3], (H, Z), jnp.float32),
        "bmu": jnp.zeros((1, Z), jnp.float32),
        "wlv": s * jax.random.normal(ks[4], (H, Z), jnp.float32),
        "blv": jnp.zeros((1, Z), jnp.float32),
        "wd": s * jax.random.normal(ks[5], (Z, DD), jnp.float32),
        "bd": jnp.zeros((1, DD), jnp.float32),
        # GRU weights already transposed to (input, 3*hidden) / (hidden, 3*hidden); gate order r,z,n
        "wih": s * jax.random.normal(ks[6], (DD, 3 * HG), jnp.float32),
        "bih": s * jax.random.normal(ks[7], (1, 3 * HG), jnp.float32),
        "whh": s * jax.random.normal(ks[8], (HG, 3 * HG), jnp.float32),
        "bhh": s * jax.random.normal(ks[9], (1, 3 * HG), jnp.float32),
        "wout": s * jax.random.normal(ks[10], (HG, V), jnp.float32),
        "bout": jnp.zeros((1, V), jnp.float32),
    }


def reference_forward(x_ncl, eps, p):
    """Pure-JAX reference mirroring the kernel math (for a sanity check)."""
    x = jnp.transpose(x_ncl, (0, 2, 1)).astype(jnp.float32)
    a1 = sum(jnp.einsum("blc,cd->bld", x[:, k:k + L1, :], p["w1"][k]) for k in range(K))
    h1 = jax.nn.relu(a1 + p["b1"])
    a2 = sum(jnp.einsum("blc,cd->bld", h1[:, k:k + L2, :], p["w2"][k]) for k in range(K))
    h2 = jax.nn.relu(a2 + p["b2"])
    h = jax.nn.relu(jnp.einsum("blc,lch->bh", h2, p["wh"]) + p["bh"])
    mu = h @ p["wmu"] + p["bmu"]
    logvar = h @ p["wlv"] + p["blv"]
    latent = mu + 0.01 * eps * jnp.exp(0.5 * logvar)
    d = jax.nn.relu(latent @ p["wd"] + p["bd"])
    x_proj = d @ p["wih"] + p["bih"]
    h_g = jnp.zeros((B, HG), jnp.float32)
    outs = []
    for _ in range(L):
        gh = h_g @ p["whh"] + p["bhh"]
        r = jax.nn.sigmoid(x_proj[:, :HG] + gh[:, :HG])
        zg = jax.nn.sigmoid(x_proj[:, HG:2 * HG] + gh[:, HG:2 * HG])
        n = jnp.tanh(x_proj[:, 2 * HG:] + r * gh[:, 2 * HG:])
        h_g = (1.0 - zg) * n + zg * h_g
        outs.append(jax.nn.softmax(h_g @ p["wout"] + p["bout"], axis=-1))
    return jnp.stack(outs, axis=1), mu, logvar


if __name__ == "__main__":
    key = jax.random.PRNGKey(0)
    kx, keps, kp = jax.random.split(key, 3)

    x = jax.random.normal(kx, (B, V, L), jnp.float32)       # NCL, PyTorch Conv1d layout
    eps = jax.random.normal(keps, (B, Z), jnp.float32)      # reparametrization noise (type2)
    params = init_params(kp)
    wslab, bslab = pack_params(params)                       # one-time wrapper-side packing

    x_recon, mu, logvar = molecular_vae_forward(x, eps, wslab, bslab)
    jax.block_until_ready((x_recon, mu, logvar))

    r_recon, r_mu, r_logvar = reference_forward(x, eps, params)
    assert jnp.allclose(x_recon, r_recon, atol=5e-2, rtol=5e-2)
    assert jnp.allclose(mu, r_mu, atol=5e-2, rtol=5e-2)
    assert jnp.allclose(logvar, r_logvar, atol=5e-2, rtol=5e-2)

    print("KERNEL_OK")
</pallas_src>

<mosaic_0001>
module attributes {stable_mosaic.version = 11 : i64} {
  func.func @_vae_kernel(%arg0: memref<2x16x8xf32, #tpu.memory_space<vmem>>, %arg1: memref<2x16xf32, #tpu.memory_space<vmem>>, %arg2: memref<288x128xf32, #tpu.memory_space<vmem>>, %arg3: memref<8x128xf32, #tpu.memory_space<vmem>>, %arg4: memref<32x8xf32, #tpu.memory_space<vmem>>, %arg5: memref<2x32xf32, #tpu.memory_space<vmem>>, %arg6: memref<32x32xf32, #tpu.memory_space<vmem>>) attributes {dimension_semantics = [], scalar_prefetch = 0 : i64, scratch_operands = 1 : i64, tpu.core_type = #tpu.core_type<tc>} {
    %c0 = arith.constant 0 : index
    %c0_0 = arith.constant 0 : index
    %0 = vector.load %arg2[%c0, %c0_0] : memref<288x128xf32, #tpu.memory_space<vmem>>, vector<24x8xf32>
    %c24 = arith.constant 24 : index
    %c0_1 = arith.constant 0 : index
    %1 = vector.load %arg2[%c24, %c0_1] : memref<288x128xf32, #tpu.memory_space<vmem>>, vector<24x8xf32>
    %c48 = arith.constant 48 : index
    %c0_2 = arith.constant 0 : index
    %2 = vector.load %arg2[%c48, %c0_2] : memref<288x128xf32, #tpu.memory_space<vmem>>, vector<96x32xf32>
    %c144 = arith.constant 144 : index
    %c0_3 = arith.constant 0 : index
    %3 = vector.load %arg2[%c144, %c0_3] : memref<288x128xf32, #tpu.memory_space<vmem>>, vector<32x32xf32>
    %c176 = arith.constant 176 : index
    %c0_4 = arith.constant 0 : index
    %4 = vector.load %arg2[%c176, %c0_4] : memref<288x128xf32, #tpu.memory_space<vmem>>, vector<16x32xf32>
    %c192 = arith.constant 192 : index
    %c0_5 = arith.constant 0 : index
    %5 = vector.load %arg2[%c192, %c0_5] : memref<288x128xf32, #tpu.memory_space<vmem>>, vector<32x96xf32>
    %c224 = arith.constant 224 : index
    %c0_6 = arith.constant 0 : index
    %6 = vector.load %arg2[%c224, %c0_6] : memref<288x128xf32, #tpu.memory_space<vmem>>, vector<32x96xf32>
    %c256 = arith.constant 256 : index
    %c0_7 = arith.constant 0 : index
    %7 = vector.load %arg2[%c256, %c0_7] : memref<288x128xf32, #tpu.memory_space<vmem>>, vector<32x8xf32>
    %c0_8 = arith.constant 0 : index
    %c0_9 = arith.constant 0 : index
    %8 = vector.load %arg3[%c0_8, %c0_9] : memref<8x128xf32, #tpu.memory_space<vmem>>, vector<1x8xf32>
    %c1 = arith.constant 1 : index
    %c0_10 = arith.constant 0 : index
    %9 = vector.load %arg3[%c1, %c0_10] : memref<8x128xf32, #tpu.memory_space<vmem>>, vector<1x8xf32>
    %c2 = arith.constant 2 : index
    %c0_11 = arith.constant 0 : index
    %10 = vector.load %arg3[%c2, %c0_11] : memref<8x128xf32, #tpu.memory_space<vmem>>, vector<1x32xf32>
    %c3 = arith.constant 3 : index
    %c0_12 = arith.constant 0 : index
    %11 = vector.load %arg3[%c3, %c0_12] : memref<8x128xf32, #tpu.memory_space<vmem>>, vector<1x32xf32>
    %c4 = arith.constant 4 : index
    %c0_13 = arith.constant 0 : index
    %12 = vector.load %arg3[%c4, %c0_13] : memref<8x128xf32, #tpu.memory_space<vmem>>, vector<1x32xf32>
    %c5 = arith.constant 5 : index
    %c0_14 = arith.constant 0 : index
    %13 = vector.load %arg3[%c5, %c0_14] : memref<8x128xf32, #tpu.memory_space<vmem>>, vector<1x96xf32>
    %c6 = arith.constant 6 : index
    %c0_15 = arith.constant 0 : index
    %14 = vector.load %arg3[%c6, %c0_15] : memref<8x128xf32, #tpu.memory_space<vmem>>, vector<1x96xf32>
    %c7 = arith.constant 7 : index
    %c0_16 = arith.constant 0 : index
    %15 = vector.load %arg3[%c7, %c0_16] : memref<8x128xf32, #tpu.memory_space<vmem>>, vector<1x8xf32>
    %c0_17 = arith.constant 0 : index
    %c0_18 = arith.constant 0 : index
    %c0_19 = arith.constant 0 : index
    %16 = vector.load %arg0[%c0_17, %c0_18, %c0_19] : memref<2x16x8xf32, #tpu.memory_space<vmem>>, vector<2x16x8xf32>
    %17 = vector.extract_strided_slice %16 {offsets = [0, 0, 0], sizes = [2, 14, 8], strides = [1, 1, 1]} : vector<2x16x8xf32> to vector<2x14x8xf32>
    %18 = vector.extract_strided_slice %16 {offsets = [0, 1, 0], sizes = [2, 14, 8], strides = [1, 1, 1]} : vector<2x16x8xf32> to vector<2x14x8xf32>
    %19 = vector.extract_strided_slice %16 {offsets = [0, 2, 0], sizes = [2, 14, 8], strides = [1, 1, 1]} : vector<2x16x8xf32> to vector<2x14x8xf32>
    %20 = tpu.concatenate %17, %18, %19 in 2 : vector<2x14x8xf32>, vector<2x14x8xf32>, vector<2x14x8xf32> -> vector<2x14x24xf32>
    %cst = arith.constant dense<0.000000e+00> : vector<2x14x8xf32>
    %21 = tpu.matmul %20, %0, %cst {dimension_numbers = #tpu.dot_dimension_numbers<[2], [0], [0, 1], [1], [0, 0, 0, 1, 1, 1], [], []>} : vector<2x14x24xf32>, vector<24x8xf32>, vector<2x14x8xf32> -> vector<2x14x8xf32>
    %22 = vector.shape_cast %8 : vector<1x8xf32> to vector<1x1x8xf32>
    %23 = vector.broadcast %22 : vector<1x1x8xf32> to vector<2x14x8xf32>
    %24 = arith.addf %21, %23 : vector<2x14x8xf32>
    %cst_20 = arith.constant 0.000000e+00 : f32
    %25 = vector.broadcast %cst_20 : f32 to vector<2x14x8xf32>
    %26 = arith.maximumf %24, %25 : vector<2x14x8xf32>
    %27 = vector.extract_strided_slice %26 {offsets = [0, 0, 0], sizes = [2, 12, 8], strides = [1, 1, 1]} : vector<2x14x8xf32> to vector<2x12x8xf32>
    %28 = vector.extract_strided_slice %26 {offsets = [0, 1, 0], sizes = [2, 12, 8], strides = [1, 1, 1]} : vector<2x14x8xf32> to vector<2x12x8xf32>
    %29 = vector.extract_strided_slice %26 {offsets = [0, 2, 0], sizes = [2, 12, 8], strides = [1, 1, 1]} : vector<2x14x8xf32> to vector<2x12x8xf32>
    %30 = tpu.concatenate %27, %28, %29 in 2 : vector<2x12x8xf32>, vector<2x12x8xf32>, vector<2x12x8xf32> -> vector<2x12x24xf32>
    %cst_21 = arith.constant dense<0.000000e+00> : vector<2x12x8xf32>
    %31 = tpu.matmul %30, %1, %cst_21 {dimension_numbers = #tpu.dot_dimension_numbers<[2], [0], [0, 1], [1], [0, 0, 0, 1, 1, 1], [], []>} : vector<2x12x24xf32>, vector<24x8xf32>, vector<2x12x8xf32> -> vector<2x12x8xf32>
    %32 = vector.shape_cast %9 : vector<1x8xf32> to vector<1x1x8xf32>
    %33 = vector.broadcast %32 : vector<1x1x8xf32> to vector<2x12x8xf32>
    %34 = arith.addf %31, %33 : vector<2x12x8xf32>
    %cst_22 = arith.constant 0.000000e+00 : f32
    %35 = vector.broadcast %cst_22 : f32 to vector<2x12x8xf32>
    %36 = arith.maximumf %34, %35 : vector<2x12x8xf32>
    %37 = vector.extract_strided_slice %36 {offsets = [0, 0, 0], sizes = [2, 1, 8], strides = [1, 1, 1]} : vector<2x12x8xf32> to vector<2x1x8xf32>
    %38 = vector.shape_cast %37 : vector<2x1x8xf32> to vector<2x8xf32>
    %39 = vector.extract_strided_slice %36 {offsets = [0, 1, 0], sizes = [2, 1, 8], strides = [1, 1, 1]} : vector<2x12x8xf32> to vector<2x1x8xf32>
    %40 = vector.shape_cast %39 : vector<2x1x8xf32> to vector<2x8xf32>
    %41 = vector.extract_strided_slice %36 {offsets = [0, 2, 0], sizes = [2, 1, 8], strides = [1, 1, 1]} : vector<2x12x8xf32> to vector<2x1x8xf32>
    %42 = vector.shape_cast %41 : vector<2x1x8xf32> to vector<2x8xf32>
    %43 = vector.extract_strided_slice %36 {offsets = [0, 3, 0], sizes = [2, 1, 8], strides = [1, 1, 1]} : vector<2x12x8xf32> to vector<2x1x8xf32>
    %44 = vector.shape_cast %43 : vector<2x1x8xf32> to vector<2x8xf32>
    %45 = vector.extract_strided_slice %36 {offsets = [0, 4, 0], sizes = [2, 1, 8], strides = [1, 1, 1]} : vector<2x12x8xf32> to vector<2x1x8xf32>
    %46 = vector.shape_cast %45 : vector<2x1x8xf32> to vector<2x8xf32>
    %47 = vector.extract_strided_slice %36 {offsets = [0, 5, 0], sizes = [2, 1, 8], strides = [1, 1, 1]} : vector<2x12x8xf32> to vector<2x1x8xf32>
    %48 = vector.shape_cast %47 : vector<2x1x8xf32> to vector<2x8xf32>
    %49 = vector.extract_strided_slice %36 {offsets = [0, 6, 0], sizes = [2, 1, 8], strides = [1, 1, 1]} : vector<2x12x8xf32> to vector<2x1x8xf32>
    %50 = vector.shape_cast %49 : vector<2x1x8xf32> to vector<2x8xf32>
    %51 = vector.extract_strided_slice %36 {offsets = [0, 7, 0], sizes = [2, 1, 8], strides = [1, 1, 1]} : vector<2x12x8xf32> to vector<2x1x8xf32>
    %52 = vector.shape_cast %51 : vector<2x1x8xf32> to vector<2x8xf32>
    %53 = vector.extract_strided_slice %36 {offsets = [0, 8, 0], sizes = [2, 1, 8], strides = [1, 1, 1]} : vector<2x12x8xf32> to vector<2x1x8xf32>
    %54 = vector.shape_cast %53 : vector<2x1x8xf32> to vector<2x8xf32>
    %55 = vector.extract_strided_slice %36 {offsets = [0, 9, 0], sizes = [2, 1, 8], strides = [1, 1, 1]} : vector<2x12x8xf32> to vector<2x1x8xf32>
    %56 = vector.shape_cast %55 : vector<2x1x8xf32> to vector<2x8xf32>
    %57 = vector.extract_strided_slice %36 {offsets = [0, 10, 0], sizes = [2, 1, 8], strides = [1, 1, 1]} : vector<2x12x8xf32> to vector<2x1x8xf32>
    %58 = vector.shape_cast %57 : vector<2x1x8xf32> to vector<2x8xf32>
    %59 = vector.extract_strided_slice %36 {offsets = [0, 11, 0], sizes = [2, 1, 8], strides = [1, 1, 1]} : vector<2x12x8xf32> to vector<2x1x8xf32>
    %60 = vector.shape_cast %59 : vector<2x1x8xf32> to vector<2x8xf32>
    %61 = tpu.concatenate %38, %40, %42, %44, %46, %48, %50, %52, %54, %56, %58, %60 in 1 : vector<2x8xf32>, vector<2x8xf32>, vector<2x8xf32>, vector<2x8xf32>, vector<2x8xf32>, vector<2x8xf32>, vector<2x8xf32>, vector<2x8xf32>, vector<2x8xf32>, vector<2x8xf32>, vector<2x8xf32>, vector<2x8xf32> -> vector<2x96xf32>
    %cst_23 = arith.constant dense<0.000000e+00> : vector<2x32xf32>
    %62 = tpu.matmul %61, %2, %cst_23 {dimension_numbers = #tpu.dot_dimension_numbers<[1], [0], [0], [1], [0, 0, 1, 1], [], []>} : vector<2x96xf32>, vector<96x32xf32>, vector<2x32xf32> -> vector<2x32xf32>
    %63 = vector.broadcast %10 : vector<1x32xf32> to vector<2x32xf32>
    %64 = arith.addf %62, %63 : vector<2x32xf32>
    %cst_24 = arith.constant 0.000000e+00 : f32
    %65 = vector.broadcast %cst_24 : f32 to vector<2x32xf32>
    %66 = arith.maximumf %64, %65 : vector<2x32xf32>
    %cst_25 = arith.constant dense<0.000000e+00> : vector<2x32xf32>
    %67 = tpu.matmul %66, %3, %cst_25 {dimension_numbers = #tpu.dot_dimension_numbers<[1], [0], [0], [1], [0, 0, 1, 1], [], []>} : vector<2x32xf32>, vector<32x32xf32>, vector<2x32xf32> -> vector<2x32xf32>
    %68 = vector.broadcast %11 : vector<1x32xf32> to vector<2x32xf32>
    %69 = arith.addf %67, %68 : vector<2x32xf32>
    %c0_26 = arith.constant 0 : index
    %c0_27 = arith.constant 0 : index
    %70 = vector.load %arg5[%c0_26, %c0_27] : memref<2x32xf32, #tpu.memory_space<vmem>>, vector<2x32xf32>
    tpu.vector_store %arg5[%c0_26, %c0_27], %69 {strides = array<i32>} : memref<2x32xf32, #tpu.memory_space<vmem>>, vector<2x32xf32>,
    %71 = vector.extract_strided_slice %69 {offsets = [0, 0], sizes = [2, 16], strides = [1, 1]} : vector<2x32xf32> to vector<2x16xf32>
    %72 = vector.extract_strided_slice %69 {offsets = [0, 16], sizes = [2, 16], strides = [1, 1]} : vector<2x32xf32> to vector<2x16xf32>
    %c0_28 = arith.constant 0 : index
    %c0_29 = arith.constant 0 : index
    %73 = vector.load %arg1[%c0_28, %c0_29] : memref<2x16xf32, #tpu.memory_space<vmem>>, vector<2x16xf32>
    %cst_30 = arith.constant 0.00999999977 : f32
    %74 = vector.broadcast %cst_30 : f32 to vector<2x16xf32>
    %75 = arith.mulf %74, %73 : vector<2x16xf32>
    %cst_31 = arith.constant 5.000000e-01 : f32
    %76 = vector.broadcast %cst_31 : f32 to vector<2x16xf32>
    %77 = arith.mulf %76, %72 : vector<2x16xf32>
    %78 = math.exp %77 : vector<2x16xf32>
    %79 = arith.mulf %75, %78 : vector<2x16xf32>
    %80 = arith.addf %71, %79 : vector<2x16xf32>
    %cst_32 = arith.constant dense<0.000000e+00> : vector<2x32xf32>
    %81 = tpu.matmul %80, %4, %cst_32 {dimension_numbers = #tpu.dot_dimension_numbers<[1], [0], [0], [1], [0, 0, 1, 1], [], []>} : vector<2x16xf32>, vector<16x32xf32>, vector<2x32xf32> -> vector<2x32xf32>
    %82 = vector.broadcast %12 : vector<1x32xf32> to vector<2x32xf32>
    %83 = arith.addf %81, %82 : vector<2x32xf32>
    %cst_33 = arith.constant 0.000000e+00 : f32
    %84 = vector.broadcast %cst_33 : f32 to vector<2x32xf32>
    %85 = arith.maximumf %83, %84 : vector<2x32xf32>
    %cst_34 = arith.constant dense<0.000000e+00> : vector<2x96xf32>
    %86 = tpu.matmul %85, %5, %cst_34 {dimension_numbers = #tpu.dot_dimension_numbers<[1], [0], [0], [1], [0, 0, 1, 1], [], []>} : vector<2x32xf32>, vector<32x96xf32>, vector<2x96xf32> -> vector<2x96xf32>
    %87 = vector.broadcast %13 : vector<1x96xf32> to vector<2x96xf32>
    %88 = arith.addf %86, %87 : vector<2x96xf32>
    %89 = vector.extract_strided_slice %88 {offsets = [0, 0], sizes = [2, 64], strides = [1, 1]} : vector<2x96xf32> to vector<2x64xf32>
    %90 = vector.extract_strided_slice %88 {offsets = [0, 64], sizes = [2, 32], strides = [1, 1]} : vector<2x96xf32> to vector<2x32xf32>
    %cst_35 = arith.constant 0.000000e+00 : f32
    %91 = vector.broadcast %cst_35 : f32 to vector<2x32xf32>
    %cst_36 = arith.constant dense<0.000000e+00> : vector<2x96xf32>
    %92 = tpu.matmul %91, %6, %cst_36 {dimension_numbers = #tpu.dot_dimension_numbers<[1], [0], [0], [1], [0, 0, 1, 1], [], []>} : vector<2x32xf32>, vector<32x96xf32>, vector<2x96xf32> -> vector<2x96xf32>
    %93 = vector.broadcast %14 : vector<1x96xf32> to vector<2x96xf32>
    %94 = arith.addf %92, %93 : vector<2x96xf32>
    %95 = vector.extract_strided_slice %94 {offsets = [0, 0], sizes = [2, 64], strides = [1, 1]} : vector<2x96xf32> to vector<2x64xf32>
    %96 = arith.addf %89, %95 : vector<2x64xf32>
    %97 = arith.negf %96 : vector<2x64xf32>
    %98 = math.exp %97 : vector<2x64xf32>
    %cst_37 = arith.constant 1.000000e+00 : f32
    %99 = vector.broadcast %cst_37 : f32 to vector<2x64xf32>
    %100 = arith.addf %99, %98 : vector<2x64xf32>
    %101 = arith.divf %99, %100 : vector<2x64xf32>
    %102 = vector.extract_strided_slice %101 {offsets = [0, 0], sizes = [2, 32], strides = [1, 1]} : vector<2x64xf32> to vector<2x32xf32>
    %103 = vector.extract_strided_slice %101 {offsets = [0, 32], sizes = [2, 32], strides = [1, 1]} : vector<2x64xf32> to vector<2x32xf32>
    %104 = vector.extract_strided_slice %94 {offsets = [0, 64], sizes = [2, 32], strides = [1, 1]} : vector<2x96xf32> to vector<2x32xf32>
    %105 = arith.mulf %102, %104 : vector<2x32xf32>
    %106 = arith.addf %90, %105 : vector<2x32xf32>
    %107 = math.tanh %106 : vector<2x32xf32>
    %cst_38 = arith.constant 1.000000e+00 : f32
    %108 = vector.broadcast %cst_38 : f32 to vector<2x32xf32>
    %109 = arith.subf %108, %103 : vector<2x32xf32>
    %110 = arith.mulf %109, %107 : vector<2x32xf32>
    %111 = arith.mulf %103, %91 : vector<2x32xf32>
    %112 = arith.addf %110, %111 : vector<2x32xf32>
    %c0_39 = arith.constant 0 : index
    %c0_40 = arith.constant 0 : index
    %113 = vector.load %arg6[%c0_39, %c0_40] : memref<32x32xf32, #tpu.memory_space<vmem>>, vector<2x32xf32>
    tpu.vector_store %arg6[%c0_39, %c0_40], %112 {strides = array<i32>} : memref<32x32xf32, #tpu.memory_space<vmem>>, vector<2x32xf32>,
    %cst_41 = arith.constant dense<0.000000e+00> : vector<2x96xf32>
    %114 = tpu.matmul %112, %6, %cst_41 {dimension_numbers = #tpu.dot_dimension_numbers<[1], [0], [0], [1], [0, 0, 1, 1], [], []>} : vector<2x32xf32>, vector<32x96xf32>, vector<2x96xf32> -> vector<2x96xf32>
    %115 = vector.broadcast %14 : vector<1x96xf32> to vector<2x96xf32>
    %116 = arith.addf %114, %115 : vector<2x96xf32>
    %117 = vector.extract_strided_slice %116 {offsets = [0, 0], sizes = [2, 64], strides = [1, 1]} : vector<2x96xf32> to vector<2x64xf32>
    %118 = arith.addf %89, %117 : vector<2x64xf32>
    %119 = arith.negf %118 : vector<2x64xf32>
    %120 = math.exp %119 : vector<2x64xf32>
    %cst_42 = arith.constant 1.000000e+00 : f32
    %121 = vector.broadcast %cst_42 : f32 to vector<2x64xf32>
    %122 = arith.addf %121, %120 : vector<2x64xf32>
    %123 = arith.divf %121, %122 : vector<2x64xf32>
    %124 = vector.extract_strided_slice %123 {offsets = [0, 0], sizes = [2, 32], strides = [1, 1]} : vector<2x64xf32> to vector<2x32xf32>
    %125 = vector.extract_strided_slice %123 {offsets = [0, 32], sizes = [2, 32], strides = [1, 1]} : vector<2x64xf32> to vector<2x32xf32>
    %126 = vector.extract_strided_slice %116 {offsets = [0, 64], sizes = [2, 32], strides = [1, 1]} : vector<2x96xf32> to vector<2x32xf32>
    %127 = arith.mulf %124, %126 : vector<2x32xf32>
    %128 = arith.addf %90, %127 : vector<2x32xf32>
    %129 = math.tanh %128 : vector<2x32xf32>
    %cst_43 = arith.constant 1.000000e+00 : f32
    %130 = vector.broadcast %cst_43 : f32 to vector<2x32xf32>
    %131 = arith.subf %130, %125 : vector<2x32xf32>
    %132 = arith.mulf %131, %129 : vector<2x32xf32>
    %133 = arith.mulf %125, %112 : vector<2x32xf32>
    %134 = arith.addf %132, %133 : vector<2x32xf32>
    %c2_44 = arith.constant 2 : index
    %c0_45 = arith.constant 0 : index
    %135 = vector.load %arg6[%c2_44, %c0_45] : memref<32x32xf32, #tpu.memory_space<vmem>>, vector<2x32xf32>
    tpu.vector_store %arg6[%c2_44, %c0_45], %134 {strides = array<i32>} : memref<32x32xf32, #tpu.memory_space<vmem>>, vector<2x32xf32>,
    %cst_46 = arith.constant dense<0.000000e+00> : vector<2x96xf32>
    %136 = tpu.matmul %134, %6, %cst_46 {dimension_numbers = #tpu.dot_dimension_numbers<[1], [0], [0], [1], [0, 0, 1, 1], [], []>} : vector<2x32xf32>, vector<32x96xf32>, vector<2x96xf32> -> vector<2x96xf32>
    %137 = vector.broadcast %14 : vector<1x96xf32> to vector<2x96xf32>
    %138 = arith.addf %136, %137 : vector<2x96xf32>
    %139 = vector.extract_strided_slice %138 {offsets = [0, 0], sizes = [2, 64], strides = [1, 1]} : vector<2x96xf32> to vector<2x64xf32>
    %140 = arith.addf %89, %139 : vector<2x64xf32>
    %141 = arith.negf %140 : vector<2x64xf32>
    %142 = math.exp %141 : vector<2x64xf32>
    %cst_47 = arith.constant 1.000000e+00 : f32
    %143 = vector.broadcast %cst_47 : f32 to vector<2x64xf32>
    %144 = arith.addf %143, %142 : vector<2x64xf32>
    %145 = arith.divf %143, %144 : vector<2x64xf32>
    %146 = vector.extract_strided_slice %145 {offsets = [0, 0], sizes = [2, 32], strides = [1, 1]} : vector<2x64xf32> to vector<2x32xf32>
    %147 = vector.extract_strided_slice %145 {offsets = [0, 32], sizes = [2, 32], strides = [1, 1]} : vector<2x64xf32> to vector<2x32xf32>
    %148 = vector.extract_strided_slice %138 {offsets = [0, 64], sizes = [2, 32], strides = [1, 1]} : vector<2x96xf32> to vector<2x32xf32>
    %149 = arith.mulf %146, %148 : vector<2x32xf32>
    %150 = arith.addf %90, %149 : vector<2x32xf32>
    %151 = math.tanh %150 : vector<2x32xf32>
    %cst_48 = arith.constant 1.000000e+00 : f32
    %152 = vector.broadcast %cst_48 : f32 to vector<2x32xf32>
    %153 = arith.subf %152, %147 : vector<2x32xf32>
    %154 = arith.mulf %153, %151 : vector<2x32xf32>
    %155 = arith.mulf %147, %134 : vector<2x32xf32>
    %156 = arith.addf %154, %155 : vector<2x32xf32>
    %c4_49 = arith.constant 4 : index
    %c0_50 = arith.constant 0 : index
    %157 = vector.load %arg6[%c4_49, %c0_50] : memref<32x32xf32, #tpu.memory_space<vmem>>, vector<2x32xf32>
    tpu.vector_store %arg6[%c4_49, %c0_50], %156 {strides = array<i32>} : memref<32x32xf32, #tpu.memory_space<vmem>>, vector<2x32xf32>,
    %cst_51 = arith.constant dense<0.000000e+00> : vector<2x96xf32>
    %158 = tpu.matmul %156, %6, %cst_51 {dimension_numbers = #tpu.dot_dimension_numbers<[1], [0], [0], [1], [0, 0, 1, 1], [], []>} : vector<2x32xf32>, vector<32x96xf32>, vector<2x96xf32> -> vector<2x96xf32>
    %159 = vector.broadcast %14 : vector<1x96xf32> to vector<2x96xf32>
    %160 = arith.addf %158, %159 : vector<2x96xf32>
    %161 = vector.extract_strided_slice %160 {offsets = [0, 0], sizes = [2, 64], strides = [1, 1]} : vector<2x96xf32> to vector<2x64xf32>
    %162 = arith.addf %89, %161 : vector<2x64xf32>
    %163 = arith.negf %162 : vector<2x64xf32>
    %164 = math.exp %163 : vector<2x64xf32>
    %cst_52 = arith.constant 1.000000e+00 : f32
    %165 = vector.broadcast %cst_52 : f32 to vector<2x64xf32>
    %166 = arith.addf %165, %164 : vector<2x64xf32>
    %167 = arith.divf %165, %166 : vector<2x64xf32>
    %168 = vector.extract_strided_slice %167 {offsets = [0, 0], sizes = [2, 32], strides = [1, 1]} : vector<2x64xf32> to vector<2x32xf32>
    %169 = vector.extract_strided_slice %167 {offsets = [0, 32], sizes = [2, 32], strides = [1, 1]} : vector<2x64xf32> to vector<2x32xf32>
    %170 = vector.extract_strided_slice %160 {offsets = [0, 64], sizes = [2, 32], strides = [1, 1]} : vector<2x96xf32> to vector<2x32xf32>
    %171 = arith.mulf %168, %170 : vector<2x32xf32>
    %172 = arith.addf %90, %171 : vector<2x32xf32>
    %173 = math.tanh %172 : vector<2x32xf32>
    %cst_53 = arith.constant 1.000000e+00 : f32
    %174 = vector.broadcast %cst_53 : f32 to vector<2x32xf32>
    %175 = arith.subf %174, %169 : vector<2x32xf32>
    %176 = arith.mulf %175, %173 : vector<2x32xf32>
    %177 = arith.mulf %169, %156 : vector<2x32xf32>
    %178 = arith.addf %176, %177 : vector<2x32xf32>
    %c6_54 = arith.constant 6 : index
    %c0_55 = arith.constant 0 : index
    %179 = vector.load %arg6[%c6_54, %c0_55] : memref<32x32xf32, #tpu.memory_space<vmem>>, vector<2x32xf32>
    tpu.vector_store %arg6[%c6_54, %c0_55], %178 {strides = array<i32>} : memref<32x32xf32, #tpu.memory_space<vmem>>, vector<2x32xf32>,
    %cst_56 = arith.constant dense<0.000000e+00> : vector<2x96xf32>
    %180 = tpu.matmul %178, %6, %cst_56 {dimension_numbers = #tpu.dot_dimension_numbers<[1], [0], [0], [1], [0, 0, 1, 1], [], []>} : vector<2x32xf32>, vector<32x96xf32>, vector<2x96xf32> -> vector<2x96xf32>
    %181 = vector.broadcast %14 : vector<1x96xf32> to vector<2x96xf32>
    %182 = arith.addf %180, %181 : vector<2x96xf32>
    %183 = vector.extract_strided_slice %182 {offsets = [0, 0], sizes = [2, 64], strides = [1, 1]} : vector<2x96xf32> to vector<2x64xf32>
    %184 = arith.addf %89, %183 : vector<2x64xf32>
    %185 = arith.negf %184 : vector<2x64xf32>
    %186 = math.exp %185 : vector<2x64xf32>
    %cst_57 = arith.constant 1.000000e+00 : f32
    %187 = vector.broadcast %cst_57 : f32 to vector<2x64xf32>
    %188 = arith.addf %187, %186 : vector<2x64xf32>
    %189 = arith.divf %187, %188 : vector<2x64xf32>
    %190 = vector.extract_strided_slice %189 {offsets = [0, 0], sizes = [2, 32], strides = [1, 1]} : vector<2x64xf32> to vector<2x32xf32>
    %191 = vector.extract_strided_slice %189 {offsets = [0, 32], sizes = [2, 32], strides = [1, 1]} : vector<2x64xf32> to vector<2x32xf32>
    %192 = vector.extract_strided_slice %182 {offsets = [0, 64], sizes = [2, 32], strides = [1, 1]} : vector<2x96xf32> to vector<2x32xf32>
    %193 = arith.mulf %190, %192 : vector<2x32xf32>
    %194 = arith.addf %90, %193 : vector<2x32xf32>
    %195 = math.tanh %194 : vector<2x32xf32>
    %cst_58 = arith.constant 1.000000e+00 : f32
    %196 = vector.broadcast %cst_58 : f32 to vector<2x32xf32>
    %197 = arith.subf %196, %191 : vector<2x32xf32>
    %198 = arith.mulf %197, %195 : vector<2x32xf32>
    %199 = arith.mulf %191, %178 : vector<2x32xf32>
    %200 = arith.addf %198, %199 : vector<2x32xf32>
    %c8 = arith.constant 8 : index
    %c0_59 = arith.constant 0 : index
    %201 = vector.load %arg6[%c8, %c0_59] : memref<32x32xf32, #tpu.memory_space<vmem>>, vector<2x32xf32>
    tpu.vector_store %arg6[%c8, %c0_59], %200 {strides = array<i32>} : memref<32x32xf32, #tpu.memory_space<vmem>>, vector<2x32xf32>,
    %cst_60 = arith.constant dense<0.000000e+00> : vector<2x96xf32>
    %202 = tpu.matmul %200, %6, %cst_60 {dimension_numbers = #tpu.dot_dimension_numbers<[1], [0], [0], [1], [0, 0, 1, 1], [], []>} : vector<2x32xf32>, vector<32x96xf32>, vector<2x96xf32> -> vector<2x96xf32>
    %203 = vector.broadcast %14 : vector<1x96xf32> to vector<2x96xf32>
    %204 = arith.addf %202, %203 : vector<2x96xf32>
    %205 = vector.extract_strided_slice %204 {offsets = [0, 0], sizes = [2, 64], strides = [1, 1]} : vector<2x96xf32> to vector<2x64xf32>
    %206 = arith.addf %89, %205 : vector<2x64xf32>
    %207 = arith.negf %206 : vector<2x64xf32>
    %208 = math.exp %207 : vector<2x64xf32>
    %cst_61 = arith.constant 1.000000e+00 : f32
    %209 = vector.broadcast %cst_61 : f32 to vector<2x64xf32>
    %210 = arith.addf %209, %208 : vector<2x64xf32>
    %211 = arith.divf %209, %210 : vector<2x64xf32>
    %212 = vector.extract_strided_slice %211 {offsets = [0, 0], sizes = [2, 32], strides = [1, 1]} : vector<2x64xf32> to vector<2x32xf32>
    %213 = vector.extract_strided_slice %211 {offsets = [0, 32], sizes = [2, 32], strides = [1, 1]} : vector<2x64xf32> to vector<2x32xf32>
    %214 = vector.extract_strided_slice %204 {offsets = [0, 64], sizes = [2, 32], strides = [1, 1]} : vector<2x96xf32> to vector<2x32xf32>
    %215 = arith.mulf %212, %214 : vector<2x32xf32>
    %216 = arith.addf %90, %215 : vector<2x32xf32>
    %217 = math.tanh %216 : vector<2x32xf32>
    %cst_62 = arith.constant 1.000000e+00 : f32
    %218 = vector.broadcast %cst_62 : f32 to vector<2x32xf32>
    %219 = arith.subf %218, %213 : vector<2x32xf32>
    %220 = arith.mulf %219, %217 : vector<2x32xf32>
    %221 = arith.mulf %213, %200 : vector<2x32xf32>
    %222 = arith.addf %220, %221 : vector<2x32xf32>
    %c10 = arith.constant 10 : index
    %c0_63 = arith.constant 0 : index
    %223 = vector.load %arg6[%c10, %c0_63] : memref<32x32xf32, #tpu.memory_space<vmem>>, vector<2x32xf32>
    tpu.vector_store %arg6[%c10, %c0_63], %222 {strides = array<i32>} : memref<32x32xf32, #tpu.memory_space<vmem>>, vector<2x32xf32>,
    %cst_64 = arith.constant dense<0.000000e+00> : vector<2x96xf32>
    %224 = tpu.matmul %222, %6, %cst_64 {dimension_numbers = #tpu.dot_dimension_numbers<[1], [0], [0], [1], [0, 0, 1, 1], [], []>} : vector<2x32xf32>, vector<32x96xf32>, vector<2x96xf32> -> vector<2x96xf32>
    %225 = vector.broadcast %14 : vector<1x96xf32> to vector<2x96xf32>
    %226 = arith.addf %224, %225 : vector<2x96xf32>
    %227 = vector.extract_strided_slice %226 {offsets = [0, 0], sizes = [2, 64], strides = [1, 1]} : vector<2x96xf32> to vector<2x64xf32>
    %228 = arith.addf %89, %227 : vector<2x64xf32>
    %229 = arith.negf %228 : vector<2x64xf32>
    %230 = math.exp %229 : vector<2x64xf32>
    %cst_65 = arith.constant 1.000000e+00 : f32
    %231 = vector.broadcast %cst_65 : f32 to vector<2x64xf32>
    %232 = arith.addf %231, %230 : vector<2x64xf32>
    %233 = arith.divf %231, %232 : vector<2x64xf32>
    %234 = vector.extract_strided_slice %233 {offsets = [0, 0], sizes = [2, 32], strides = [1, 1]} : vector<2x64xf32> to vector<2x32xf32>
    %235 = vector.extract_strided_slice %233 {offsets = [0, 32], sizes = [2, 32], strides = [1, 1]} : vector<2x64xf32> to vector<2x32xf32>
    %236 = vector.extract_strided_slice %226 {offsets = [0, 64], sizes = [2, 32], strides = [1, 1]} : vector<2x96xf32> to vector<2x32xf32>
    %237 = arith.mulf %234, %236 : vector<2x32xf32>
    %238 = arith.addf %90, %237 : vector<2x32xf32>
    %239 = math.tanh %238 : vector<2x32xf32>
    %cst_66 = arith.constant 1.000000e+00 : f32
    %240 = vector.broadcast %cst_66 : f32 to vector<2x32xf32>
    %241 = arith.subf %240, %235 : vector<2x32xf32>
    %242 = arith.mulf %241, %239 : vector<2x32xf32>
    %243 = arith.mulf %235, %222 : vector<2x32xf32>
    %244 = arith.addf %242, %243 : vector<2x32xf32>
    %c12 = arith.constant 12 : index
    %c0_67 = arith.constant 0 : index
    %245 = vector.load %arg6[%c12, %c0_67] : memref<32x32xf32, #tpu.memory_space<vmem>>, vector<2x32xf32>
    tpu.vector_store %arg6[%c12, %c0_67], %244 {strides = array<i32>} : memref<32x32xf32, #tpu.memory_space<vmem>>, vector<2x32xf32>,
    %cst_68 = arith.constant dense<0.000000e+00> : vector<2x96xf32>
    %246 = tpu.matmul %244, %6, %cst_68 {dimension_numbers = #tpu.dot_dimension_numbers<[1], [0], [0], [1], [0, 0, 1, 1], [], []>} : vector<2x32xf32>, vector<32x96xf32>, vector<2x96xf32> -> vector<2x96xf32>
    %247 = vector.broadcast %14 : vector<1x96xf32> to vector<2x96xf32>
    %248 = arith.addf %246, %247 : vector<2x96xf32>
    %249 = vector.extract_strided_slice %248 {offsets = [0, 0], sizes = [2, 64], strides = [1, 1]} : vector<2x96xf32> to vector<2x64xf32>
    %250 = arith.addf %89, %249 : vector<2x64xf32>
    %251 = arith.negf %250 : vector<2x64xf32>
    %252 = math.exp %251 : vector<2x64xf32>
    %cst_69 = arith.constant 1.000000e+00 : f32
    %253 = vector.broadcast %cst_69 : f32 to vector<2x64xf32>
    %254 = arith.addf %253, %252 : vector<2x64xf32>
    %255 = arith.divf %253, %254 : vector<2x64xf32>
    %256 = vector.extract_strided_slice %255 {offsets = [0, 0], sizes = [2, 32], strides = [1, 1]} : vector<2x64xf32> to vector<2x32xf32>
    %257 = vector.extract_strided_slice %255 {offsets = [0, 32], sizes = [2, 32], strides = [1, 1]} : vector<2x64xf32> to vector<2x32xf32>
    %258 = vector.extract_strided_slice %248 {offsets = [0, 64], sizes = [2, 32], strides = [1, 1]} : vector<2x96xf32> to vector<2x32xf32>
    %259 = arith.mulf %256, %258 : vector<2x32xf32>
    %260 = arith.addf %90, %259 : vector<2x32xf32>
    %261 = math.tanh %260 : vector<2x32xf32>
    %cst_70 = arith.constant 1.000000e+00 : f32
    %262 = vector.broadcast %cst_70 : f32 to vector<2x32xf32>
    %263 = arith.subf %262, %257 : vector<2x32xf32>
    %264 = arith.mulf %263, %261 : vector<2x32xf32>
    %265 = arith.mulf %257, %244 : vector<2x32xf32>
    %266 = arith.addf %264, %265 : vector<2x32xf32>
    %c14 = arith.constant 14 : index
    %c0_71 = arith.constant 0 : index
    %267 = vector.load %arg6[%c14, %c0_71] : memref<32x32xf32, #tpu.memory_space<vmem>>, vector<2x32xf32>
    tpu.vector_store %arg6[%c14, %c0_71], %266 {strides = array<i32>} : memref<32x32xf32, #tpu.memory_space<vmem>>, vector<2x32xf32>,
    %cst_72 = arith.constant dense<0.000000e+00> : vector<2x96xf32>
    %268 = tpu.matmul %266, %6, %cst_72 {dimension_numbers = #tpu.dot_dimension_numbers<[1], [0], [0], [1], [0, 0, 1, 1], [], []>} : vector<2x32xf32>, vector<32x96xf32>, vector<2x96xf32> -> vector<2x96xf32>
    %269 = vector.broadcast %14 : vector<1x96xf32> to vector<2x96xf32>
    %270 = arith.addf %268, %269 : vector<2x96xf32>
    %271 = vector.extract_strided_slice %270 {offsets = [0, 0], sizes = [2, 64], strides = [1, 1]} : vector<2x96xf32> to vector<2x64xf32>
    %272 = arith.addf %89, %271 : vector<2x64xf32>
    %273 = arith.negf %272 : vector<2x64xf32>
    %274 = math.exp %273 : vector<2x64xf32>
    %cst_73 = arith.constant 1.000000e+00 : f32
    %275 = vector.broadcast %cst_73 : f32 to vector<2x64xf32>
    %276 = arith.addf %275, %274 : vector<2x64xf32>
    %277 = arith.divf %275, %276 : vector<2x64xf32>
    %278 = vector.extract_strided_slice %277 {offsets = [0, 0], sizes = [2, 32], strides = [1, 1]} : vector<2x64xf32> to vector<2x32xf32>
    %279 = vector.extract_strided_slice %277 {offsets = [0, 32], sizes = [2, 32], strides = [1, 1]} : vector<2x64xf32> to vector<2x32xf32>
    %280 = vector.extract_strided_slice %270 {offsets = [0, 64], sizes = [2, 32], strides = [1, 1]} : vector<2x96xf32> to vector<2x32xf32>
    %281 = arith.mulf %278, %280 : vector<2x32xf32>
    %282 = arith.addf %90, %281 : vector<2x32xf32>
    %283 = math.tanh %282 : vector<2x32xf32>
    %cst_74 = arith.constant 1.000000e+00 : f32
    %284 = vector.broadcast %cst_74 : f32 to vector<2x32xf32>
    %285 = arith.subf %284, %279 : vector<2x32xf32>
    %286 = arith.mulf %285, %283 : vector<2x32xf32>
    %287 = arith.mulf %279, %266 : vector<2x32xf32>
    %288 = arith.addf %286, %287 : vector<2x32xf32>
    %c16 = arith.constant 16 : index
    %c0_75 = arith.constant 0 : index
    %289 = vector.load %arg6[%c16, %c0_75] : memref<32x32xf32, #tpu.memory_space<vmem>>, vector<2x32xf32>
    tpu.vector_store %arg6[%c16, %c0_75], %288 {strides = array<i32>} : memref<32x32xf32, #tpu.memory_space<vmem>>, vector<2x32xf32>,
    %cst_76 = arith.constant dense<0.000000e+00> : vector<2x96xf32>
    %290 = tpu.matmul %288, %6, %cst_76 {dimension_numbers = #tpu.dot_dimension_numbers<[1], [0], [0], [1], [0, 0, 1, 1], [], []>} : vector<2x32xf32>, vector<32x96xf32>, vector<2x96xf32> -> vector<2x96xf32>
    %291 = vector.broadcast %14 : vector<1x96xf32> to vector<2x96xf32>
    %292 = arith.addf %290, %291 : vector<2x96xf32>
    %293 = vector.extract_strided_slice %292 {offsets = [0, 0], sizes = [2, 64], strides = [1, 1]} : vector<2x96xf32> to vector<2x64xf32>
    %294 = arith.addf %89, %293 : vector<2x64xf32>
    %295 = arith.negf %294 : vector<2x64xf32>
    %296 = math.exp %295 : vector<2x64xf32>
    %cst_77 = arith.constant 1.000000e+00 : f32
    %297 = vector.broadcast %cst_77 : f32 to vector<2x64xf32>
    %298 = arith.addf %297, %296 : vector<2x64xf32>
    %299 = arith.divf %297, %298 : vector<2x64xf32>
    %300 = vector.extract_strided_slice %299 {offsets = [0, 0], sizes = [2, 32], strides = [1, 1]} : vector<2x64xf32> to vector<2x32xf32>
    %301 = vector.extract_strided_slice %299 {offsets = [0, 32], sizes = [2, 32], strides = [1, 1]} : vector<2x64xf32> to vector<2x32xf32>
    %302 = vector.extract_strided_slice %292 {offsets = [0, 64], sizes = [2, 32], strides = [1, 1]} : vector<2x96xf32> to vector<2x32xf32>
    %303 = arith.mulf %300, %302 : vector<2x32xf32>
    %304 = arith.addf %90, %303 : vector<2x32xf32>
    %305 = math.tanh %304 : vector<2x32xf32>
    %cst_78 = arith.constant 1.000000e+00 : f32
    %306 = vector.broadcast %cst_78 : f32 to vector<2x32xf32>
    %307 = arith.subf %306, %301 : vector<2x32xf32>
    %308 = arith.mulf %307, %305 : vector<2x32xf32>
    %309 = arith.mulf %301, %288 : vector<2x32xf32>
    %310 = arith.addf %308, %309 : vector<2x32xf32>
    %c18 = arith.constant 18 : index
    %c0_79 = arith.constant 0 : index
    %311 = vector.load %arg6[%c18, %c0_79] : memref<32x32xf32, #tpu.memory_space<vmem>>, vector<2x32xf32>
    tpu.vector_store %arg6[%c18, %c0_79], %310 {strides = array<i32>} : memref<32x32xf32, #tpu.memory_space<vmem>>, vector<2x32xf32>,
    %cst_80 = arith.constant dense<0.000000e+00> : vector<2x96xf32>
    %312 = tpu.matmul %310, %6, %cst_80 {dimension_numbers = #tpu.dot_dimension_numbers<[1], [0], [0], [1], [0, 0, 1, 1], [], []>} : vector<2x32xf32>, vector<32x96xf32>, vector<2x96xf32> -> vector<2x96xf32>
    %313 = vector.broadcast %14 : vector<1x96xf32> to vector<2x96xf32>
    %314 = arith.addf %312, %313 : vector<2x96xf32>
    %315 = vector.extract_strided_slice %314 {offsets = [0, 0], sizes = [2, 64], strides = [1, 1]} : vector<2x96xf32> to vector<2x64xf32>
    %316 = arith.addf %89, %315 : vector<2x64xf32>
    %317 = arith.negf %316 : vector<2x64xf32>
    %318 = math.exp %317 : vector<2x64xf32>
    %cst_81 = arith.constant 1.000000e+00 : f32
    %319 = vector.broadcast %cst_81 : f32 to vector<2x64xf32>
    %320 = arith.addf %319, %318 : vector<2x64xf32>
    %321 = arith.divf %319, %320 : vector<2x64xf32>
    %322 = vector.extract_strided_slice %321 {offsets = [0, 0], sizes = [2, 32], strides = [1, 1]} : vector<2x64xf32> to vector<2x32xf32>
    %323 = vector.extract_strided_slice %321 {offsets = [0, 32], sizes = [2, 32], strides = [1, 1]} : vector<2x64xf32> to vector<2x32xf32>
    %324 = vector.extract_strided_slice %314 {offsets = [0, 64], sizes = [2, 32], strides = [1, 1]} : vector<2x96xf32> to vector<2x32xf32>
    %325 = arith.mulf %322, %324 : vector<2x32xf32>
    %326 = arith.addf %90, %325 : vector<2x32xf32>
    %327 = math.tanh %326 : vector<2x32xf32>
    %cst_82 = arith.constant 1.000000e+00 : f32
    %328 = vector.broadcast %cst_82 : f32 to vector<2x32xf32>
    %329 = arith.subf %328, %323 : vector<2x32xf32>
    %330 = arith.mulf %329, %327 : vector<2x32xf32>
    %331 = arith.mulf %323, %310 : vector<2x32xf32>
    %332 = arith.addf %330, %331 : vector<2x32xf32>
    %c20 = arith.constant 20 : index
    %c0_83 = arith.constant 0 : index
    %333 = vector.load %arg6[%c20, %c0_83] : memref<32x32xf32, #tpu.memory_space<vmem>>, vector<2x32xf32>
    tpu.vector_store %arg6[%c20, %c0_83], %332 {strides = array<i32>} : memref<32x32xf32, #tpu.memory_space<vmem>>, vector<2x32xf32>,
    %cst_84 = arith.constant dense<0.000000e+00> : vector<2x96xf32>
    %334 = tpu.matmul %332, %6, %cst_84 {dimension_numbers = #tpu.dot_dimension_numbers<[1], [0], [0], [1], [0, 0, 1, 1], [], []>} : vector<2x32xf32>, vector<32x96xf32>, vector<2x96xf32> -> vector<2x96xf32>
    %335 = vector.broadcast %14 : vector<1x96xf32> to vector<2x96xf32>
    %336 = arith.addf %334, %335 : vector<2x96xf32>
    %337 = vector.extract_strided_slice %336 {offsets = [0, 0], sizes = [2, 64], strides = [1, 1]} : vector<2x96xf32> to vector<2x64xf32>
    %338 = arith.addf %89, %337 : vector<2x64xf32>
    %339 = arith.negf %338 : vector<2x64xf32>
    %340 = math.exp %339 : vector<2x64xf32>
    %cst_85 = arith.constant 1.000000e+00 : f32
    %341 = vector.broadcast %cst_85 : f32 to vector<2x64xf32>
    %342 = arith.addf %341, %340 : vector<2x64xf32>
    %343 = arith.divf %341, %342 : vector<2x64xf32>
    %344 = vector.extract_strided_slice %343 {offsets = [0, 0], sizes = [2, 32], strides = [1, 1]} : vector<2x64xf32> to vector<2x32xf32>
    %345 = vector.extract_strided_slice %343 {offsets = [0, 32], sizes = [2, 32], strides = [1, 1]} : vector<2x64xf32> to vector<2x32xf32>
    %346 = vector.extract_strided_slice %336 {offsets = [0, 64], sizes = [2, 32], strides = [1, 1]} : vector<2x96xf32> to vector<2x32xf32>
    %347 = arith.mulf %344, %346 : vector<2x32xf32>
    %348 = arith.addf %90, %347 : vector<2x32xf32>
    %349 = math.tanh %348 : vector<2x32xf32>
    %cst_86 = arith.constant 1.000000e+00 : f32
    %350 = vector.broadcast %cst_86 : f32 to vector<2x32xf32>
    %351 = arith.subf %350, %345 : vector<2x32xf32>
    %352 = arith.mulf %351, %349 : vector<2x32xf32>
    %353 = arith.mulf %345, %332 : vector<2x32xf32>
    %354 = arith.addf %352, %353 : vector<2x32xf32>
    %c22 = arith.constant 22 : index
    %c0_87 = arith.constant 0 : index
    %355 = vector.load %arg6[%c22, %c0_87] : memref<32x32xf32, #tpu.memory_space<vmem>>, vector<2x32xf32>
    tpu.vector_store %arg6[%c22, %c0_87], %354 {strides = array<i32>} : memref<32x32xf32, #tpu.memory_space<vmem>>, vector<2x32xf32>,
    %cst_88 = arith.constant dense<0.000000e+00> : vector<2x96xf32>
    %356 = tpu.matmul %354, %6, %cst_88 {dimension_numbers = #tpu.dot_dimension_numbers<[1], [0], [0], [1], [0, 0, 1, 1], [], []>} : vector<2x32xf32>, vector<32x96xf32>, vector<2x96xf32> -> vector<2x96xf32>
    %357 = vector.broadcast %14 : vector<1x96xf32> to vector<2x96xf32>
    %358 = arith.addf %356, %357 : vector<2x96xf32>
    %359 = vector.extract_strided_slice %358 {offsets = [0, 0], sizes = [2, 64], strides = [1, 1]} : vector<2x96xf32> to vector<2x64xf32>
    %360 = arith.addf %89, %359 : vector<2x64xf32>
    %361 = arith.negf %360 : vector<2x64xf32>
    %362 = math.exp %361 : vector<2x64xf32>
    %cst_89 = arith.constant 1.000000e+00 : f32
    %363 = vector.broadcast %cst_89 : f32 to vector<2x64xf32>
    %364 = arith.addf %363, %362 : vector<2x64xf32>
    %365 = arith.divf %363, %364 : vector<2x64xf32>
    %366 = vector.extract_strided_slice %365 {offsets = [0, 0], sizes = [2, 32], strides = [1, 1]} : vector<2x64xf32> to vector<2x32xf32>
    %367 = vector.extract_strided_slice %365 {offsets = [0, 32], sizes = [2, 32], strides = [1, 1]} : vector<2x64xf32> to vector<2x32xf32>
    %368 = vector.extract_strided_slice %358 {offsets = [0, 64], sizes = [2, 32], strides = [1, 1]} : vector<2x96xf32> to vector<2x32xf32>
    %369 = arith.mulf %366, %368 : vector<2x32xf32>
    %370 = arith.addf %90, %369 : vector<2x32xf32>
    %371 = math.tanh %370 : vector<2x32xf32>
    %cst_90 = arith.constant 1.000000e+00 : f32
    %372 = vector.broadcast %cst_90 : f32 to vector<2x32xf32>
    %373 = arith.subf %372, %367 : vector<2x32xf32>
    %374 = arith.mulf %373, %371 : vector<2x32xf32>
    %375 = arith.mulf %367, %354 : vector<2x32xf32>
    %376 = arith.addf %374, %375 : vector<2x32xf32>
    %c24_91 = arith.constant 24 : index
    %c0_92 = arith.constant 0 : index
    %377 = vector.load %arg6[%c24_91, %c0_92] : memref<32x32xf32, #tpu.memory_space<vmem>>, vector<2x32xf32>
    tpu.vector_store %arg6[%c24_91, %c0_92], %376 {strides = array<i32>} : memref<32x32xf32, #tpu.memory_space<vmem>>, vector<2x32xf32>,
    %cst_93 = arith.constant dense<0.000000e+00> : vector<2x96xf32>
    %378 = tpu.matmul %376, %6, %cst_93 {dimension_numbers = #tpu.dot_dimension_numbers<[1], [0], [0], [1], [0, 0, 1, 1], [], []>} : vector<2x32xf32>, vector<32x96xf32>, vector<2x96xf32> -> vector<2x96xf32>
    %379 = vector.broadcast %14 : vector<1x96xf32> to vector<2x96xf32>
    %380 = arith.addf %378, %379 : vector<2x96xf32>
    %381 = vector.extract_strided_slice %380 {offsets = [0, 0], sizes = [2, 64], strides = [1, 1]} : vector<2x96xf32> to vector<2x64xf32>
    %382 = arith.addf %89, %381 : vector<2x64xf32>
    %383 = arith.negf %382 : vector<2x64xf32>
    %384 = math.exp %383 : vector<2x64xf32>
    %cst_94 = arith.constant 1.000000e+00 : f32
    %385 = vector.broadcast %cst_94 : f32 to vector<2x64xf32>
    %386 = arith.addf %385, %384 : vector<2x64xf32>
    %387 = arith.divf %385, %386 : vector<2x64xf32>
    %388 = vector.extract_strided_slice %387 {offsets = [0, 0], sizes = [2, 32], strides = [1, 1]} : vector<2x64xf32> to vector<2x32xf32>
    %389 = vector.extract_strided_slice %387 {offsets = [0, 32], sizes = [2, 32], strides = [1, 1]} : vector<2x64xf32> to vector<2x32xf32>
    %390 = vector.extract_strided_slice %380 {offsets = [0, 64], sizes = [2, 32], strides = [1, 1]} : vector<2x96xf32> to vector<2x32xf32>
    %391 = arith.mulf %388, %390 : vector<2x32xf32>
    %392 = arith.addf %90, %391 : vector<2x32xf32>
    %393 = math.tanh %392 : vector<2x32xf32>
    %cst_95 = arith.constant 1.000000e+00 : f32
    %394 = vector.broadcast %cst_95 : f32 to vector<2x32xf32>
    %395 = arith.subf %394, %389 : vector<2x32xf32>
    %396 = arith.mulf %395, %393 : vector<2x32xf32>
    %397 = arith.mulf %389, %376 : vector<2x32xf32>
    %398 = arith.addf %396, %397 : vector<2x32xf32>
    %c26 = arith.constant 26 : index
    %c0_96 = arith.constant 0 : index
    %399 = vector.load %arg6[%c26, %c0_96] : memref<32x32xf32, #tpu.memory_space<vmem>>, vector<2x32xf32>
    tpu.vector_store %arg6[%c26, %c0_96], %398 {strides = array<i32>} : memref<32x32xf32, #tpu.memory_space<vmem>>, vector<2x32xf32>,
    %cst_97 = arith.constant dense<0.000000e+00> : vector<2x96xf32>
    %400 = tpu.matmul %398, %6, %cst_97 {dimension_numbers = #tpu.dot_dimension_numbers<[1], [0], [0], [1], [0, 0, 1, 1], [], []>} : vector<2x32xf32>, vector<32x96xf32>, vector<2x96xf32> -> vector<2x96xf32>
    %401 = vector.broadcast %14 : vector<1x96xf32> to vector<2x96xf32>
    %402 = arith.addf %400, %401 : vector<2x96xf32>
    %403 = vector.extract_strided_slice %402 {offsets = [0, 0], sizes = [2, 64], strides = [1, 1]} : vector<2x96xf32> to vector<2x64xf32>
    %404 = arith.addf %89, %403 : vector<2x64xf32>
    %405 = arith.negf %404 : vector<2x64xf32>
    %406 = math.exp %405 : vector<2x64xf32>
    %cst_98 = arith.constant 1.000000e+00 : f32
    %407 = vector.broadcast %cst_98 : f32 to vector<2x64xf32>
    %408 = arith.addf %407, %406 : vector<2x64xf32>
    %409 = arith.divf %407, %408 : vector<2x64xf32>
    %410 = vector.extract_strided_slice %409 {offsets = [0, 0], sizes = [2, 32], strides = [1, 1]} : vector<2x64xf32> to vector<2x32xf32>
    %411 = vector.extract_strided_slice %409 {offsets = [0, 32], sizes = [2, 32], strides = [1, 1]} : vector<2x64xf32> to vector<2x32xf32>
    %412 = vector.extract_strided_slice %402 {offsets = [0, 64], sizes = [2, 32], strides = [1, 1]} : vector<2x96xf32> to vector<2x32xf32>
    %413 = arith.mulf %410, %412 : vector<2x32xf32>
    %414 = arith.addf %90, %413 : vector<2x32xf32>
    %415 = math.tanh %414 : vector<2x32xf32>
    %cst_99 = arith.constant 1.000000e+00 : f32
    %416 = vector.broadcast %cst_99 : f32 to vector<2x32xf32>
    %417 = arith.subf %416, %411 : vector<2x32xf32>
    %418 = arith.mulf %417, %415 : vector<2x32xf32>
    %419 = arith.mulf %411, %398 : vector<2x32xf32>
    %420 = arith.addf %418, %419 : vector<2x32xf32>
    %c28 = arith.constant 28 : index
    %c0_100 = arith.constant 0 : index
    %421 = vector.load %arg6[%c28, %c0_100] : memref<32x32xf32, #tpu.memory_space<vmem>>, vector<2x32xf32>
    tpu.vector_store %arg6[%c28, %c0_100], %420 {strides = array<i32>} : memref<32x32xf32, #tpu.memory_space<vmem>>, vector<2x32xf32>,
    %cst_101 = arith.constant dense<0.000000e+00> : vector<2x96xf32>
    %422 = tpu.matmul %420, %6, %cst_101 {dimension_numbers = #tpu.dot_dimension_numbers<[1], [0], [0], [1], [0, 0, 1, 1], [], []>} : vector<2x32xf32>, vector<32x96xf32>, vector<2x96xf32> -> vector<2x96xf32>
    %423 = vector.broadcast %14 : vector<1x96xf32> to vector<2x96xf32>
    %424 = arith.addf %422, %423 : vector<2x96xf32>
    %425 = vector.extract_strided_slice %424 {offsets = [0, 0], sizes = [2, 64], strides = [1, 1]} : vector<2x96xf32> to vector<2x64xf32>
    %426 = arith.addf %89, %425 : vector<2x64xf32>
    %427 = arith.negf %426 : vector<2x64xf32>
    %428 = math.exp %427 : vector<2x64xf32>
    %cst_102 = arith.constant 1.000000e+00 : f32
    %429 = vector.broadcast %cst_102 : f32 to vector<2x64xf32>
    %430 = arith.addf %429, %428 : vector<2x64xf32>
    %431 = arith.divf %429, %430 : vector<2x64xf32>
    %432 = vector.extract_strided_slice %431 {offsets = [0, 0], sizes = [2, 32], strides = [1, 1]} : vector<2x64xf32> to vector<2x32xf32>
    %433 = vector.extract_strided_slice %431 {offsets = [0, 32], sizes = [2, 32], strides = [1, 1]} : vector<2x64xf32> to vector<2x32xf32>
    %434 = vector.extract_strided_slice %424 {offsets = [0, 64], sizes = [2, 32], strides = [1, 1]} : vector<2x96xf32> to vector<2x32xf32>
    %435 = arith.mulf %432, %434 : vector<2x32xf32>
    %436 = arith.addf %90, %435 : vector<2x32xf32>
    %437 = math.tanh %436 : vector<2x32xf32>
    %cst_103 = arith.constant 1.000000e+00 : f32
    %438 = vector.broadcast %cst_103 : f32 to vector<2x32xf32>
    %439 = arith.subf %438, %433 : vector<2x32xf32>
    %440 = arith.mulf %439, %437 : vector<2x32xf32>
    %441 = arith.mulf %433, %420 : vector<2x32xf32>
    %442 = arith.addf %440, %441 : vector<2x32xf32>
    %c30 = arith.constant 30 : index
    %c0_104 = arith.constant 0 : index
    %443 = vector.load %arg6[%c30, %c0_104] : memref<32x32xf32, #tpu.memory_space<vmem>>, vector<2x32xf32>
    tpu.vector_store %arg6[%c30, %c0_104], %442 {strides = array<i32>} : memref<32x32xf32, #tpu.memory_space<vmem>>, vector<2x32xf32>,
    %c0_105 = arith.constant 0 : index
    %c0_106 = arith.constant 0 : index
    %444 = vector.load %arg6[%c0_105, %c0_106] : memref<32x32xf32, #tpu.memory_space<vmem>>, vector<32x32xf32>
    %cst_107 = arith.constant dense<0.000000e+00> : vector<32x8xf32>
    %445 = tpu.matmul %444, %7, %cst_107 {dimension_numbers = #tpu.dot_dimension_numbers<[1], [0], [0], [1], [0, 0, 1, 1], [], []>} : vector<32x32xf32>, vector<32x8xf32>, vector<32x8xf32> -> vector<32x8xf32>
    %446 = vector.broadcast %15 : vector<1x8xf32> to vector<32x8xf32>
    %447 = arith.addf %445, %446 : vector<32x8xf32>
    %cst_108 = arith.constant dense<0xFF800000> : vector<32xf32>
    %448 = vector.multi_reduction <maximumf>, %447, %cst_108 [1] : vector<32x8xf32> to vector<32xf32>
    %449 = vector.shape_cast %448 : vector<32xf32> to vector<32x1xf32>
    %450 = vector.broadcast %449 : vector<32x1xf32> to vector<32x8xf32>
    %451 = arith.subf %447, %450 : vector<32x8xf32>
    %452 = math.exp %451 : vector<32x8xf32>
    %cst_109 = arith.constant dense<0.000000e+00> : vector<32xf32>
    %453 = vector.multi_reduction <add>, %452, %cst_109 [1] : vector<32x8xf32> to vector<32xf32>
    %454 = vector.shape_cast %453 : vector<32xf32> to vector<32x1xf32>
    %455 = vector.broadcast %454 : vector<32x1xf32> to vector<32x8xf32>
    %456 = arith.divf %452, %455 : vector<32x8xf32>
    %c0_110 = arith.constant 0 : index
    %c0_111 = arith.constant 0 : index
    %457 = vector.load %arg4[%c0_110, %c0_111] : memref<32x8xf32, #tpu.memory_space<vmem>>, vector<32x8xf32>
    tpu.vector_store %arg4[%c0_110, %c0_111], %456 {strides = array<i32>} : memref<32x8xf32, #tpu.memory_space<vmem>>, vector<32x8xf32>,
    return
  }
}

</mosaic_0001>

<bundles_post_ra>
// kernel: molecular_vae_forward.1
= control target key start
LH: loop header
LB: loop body
LE: loop exit
PB: predicated region body
PF: predicated region fallthrough
CT: control target
= control target key end

     0   :  { %11 = vsyncpa [#allocation4], 0  ;;  %s3873_s18 = smov [#allocation3]   ;;  %s4468_s0 = inlined_call_operand.vmem [shape: f32[2,16,8], index: 0, kind: input, shape index: {}]   ;;  %s4469_s1 = inlined_call_operand.vmem [shape: f32[2,16], index: 1, kind: input, shape index: {}]   ;;  %s4470_s2 = inlined_call_operand.hbm [shape: f32[288,128], index: 2, kind: input, shape index: {}]   ;;  %s4471_s3 = inlined_call_operand.vmem [shape: f32[8,128], index: 3, kind: input, shape index: {}]   ;;  %s4472_s4 = inlined_call_operand.vmem [shape: f32[32,8], index: 4, kind: output, shape index: {0}]   ;;  %s4473_s5 = inlined_call_operand.vmem [shape: f32[2,32], index: 5, kind: output, shape index: {1}]  }
   0x1   :  { %s21_s19 = sshll.u32 %s3873_s18, 4  ;;  %s3849_s22 = scalar_lea.hbm %s4470_s2, 4608  ;;  %s22_s19 = int_to_ptr.vmem [resolvable:$true] %s21_s19 }
   0x2   :  { %p3850_p0 = scmp.ne.s32.totalorder %s4470_s2, %s3849_s22  ;;  %p3853_p1 = scmp.lt.u32.totalorder %s3849_s22, %s4470_s2 }
   0x4   :  { %p3855_p2 = pnand %p3853_p1, %p3850_p0 }
   0x6   :  { %3858 = shalt.err (!%p3855_p2)
}
   0x7   :  { %s3859_s27 = scalar_lea.vmem %s22_s19, 4608  ;;  %p3864_p4 = scmp.lt.s32.totalorder %s22_s19, %s22_s19 }
   0x8   :  { %p3860_p3 = scmp.ne.s32.totalorder %s22_s19, %s3859_s27  ;;  %p3865_p5 = scmp.lt.s32.totalorder %s3859_s27, %s3859_s27 }
   0xa   :  { %p3866_p6 = por %p3865_p5, %p3864_p4 }
   0xc   :  { %p3867_p7 = pnand %p3866_p6, %p3860_p3 }
   0xe   :  { %3870 = shalt.err (!%p3867_p7)
}
   0xf   :  { %s3874_s28 = smov 128   ;;  %s3875_s29 = smov 8  }
  0x10   :  { %27 = dma.hbm_to_vmem [thread:$0]  %s4470_s2, 4608, %s22_s19, [#allocation4], %s3874_s28, %s3874_s28, %s3875_s29  }
  0x11   :  { %3871 = dma.done.wait [#allocation4], 4608  }
  0x12   :  { %3872 = vsyncadd [#allocation4], 4294962688  ;;  %v78_v0 = vld [vmem:[%s4468_s0 + $0x8] sm:$0xff]  ;;  %v77_v1 = vld [vmem:[%s4468_s0] sm:$0xff]  ;;  %vm85_vm0 = vcmask 1046528   ;;  %vm104_vm1 = vcmask 1045504   ;;  %v145_v22 = vlaneseq }
  0x13   :  { %v79_v2 = vld [vmem:[%s4468_s0 + $0x10] sm:$0xff]  ;;  %v87_v3 = vrot.slane %v78_v0, 1  ;;  %v86_v4 = vrot.slane %v77_v1, 1  ;;  %v106_v5 = vrot.slane %v78_v0, 2  ;;  %v105_v6 = vrot.slane %v77_v1, 2  ;;  %v3947_v7 = vld [vmem:[%s4468_s0 + $0x18] sm:$0xff] }
  0x14   :  { %v33_v8 = vld [vmem:[#allocation3] sm:$0xff]  ;;  %v34_v9 = vld [vmem:[#allocation3 + $0x8] sm:$0xff]  ;;  %v108_v12 = vrot.slane %v79_v2, 2  ;;  %v109_v13 = vrot.slane %v3947_v7, 2  ;;  %v89_v15 = vrot.slane %v79_v2, 1  ;;  %v90_v16 = vrot.slane %v3947_v7, 1 }
  0x15   :  { %94 = vrot.lane.b32.xlu1 %v87_v3, %s3875_s29  ;;  %v88_v10 = vsel %vm85_vm0, %v86_v4, %v87_v3  ;;  %v3571_v11 = vpack.c.bf16 %v34_v9, %v33_v8  ;;  %v107_v14 = vsel %vm104_vm1, %v105_v6, %v106_v5  ;;  %s3876_s0 = smov 16   ;;  %v35_v17 = vld [vmem:[#allocation3 + $0x10] sm:$0xff]  ;;  %v3877_v20 = vmov 1983009808   ;;  %s3881_s18 = smov 24  }
  0x16   :  { %92 = vrot.lane.b32.xlu0 %v88_v10, %s3875_s29  ;;  %v110_v18 = vsel %vm104_vm1, %v108_v12, %v109_v13  ;;  %v91_v19 = vsel %vm85_vm0, %v89_v15, %v90_v16  ;;  %v143_v21 = vunpack.c.l.s4 %v3877_v20  ;;  %v3963_v24 = vshrl.u32 %v145_v22, 7  ;;  %s3882_s19 = smov 32   ;;  %s3883_s20 = smov 40  }
  0x17   :  { %3572 = vmatprep.subr.bf16.mxu1 %v3571_v11  ;;  %vm123_vm2 = vcmask 64512   ;;  %vm128_vm3 = vcmask 130048   ;;  %vm331_vm4 = vcmask 195584   ;;  %vm3880_vm5 = vmmov 0   ;;  %s3884_s21 = smov 48   ;;  %s3885_s22 = smov 56  }
  0x18   :  { %3574 = vmatpush3.bf16.msra.mxu1 %v3571_v11  ;;  %v144_v23 = vunpack.c.0.s8 %v143_v21  ;;  %vm820_vm6 = vcmask 1041409   ;;  %s3886_s23 = smov 64   ;;  %s3887_s24 = smov 72   ;;  %vm962_vm7 = vcmask 261120   ;;  %vm964_vm8 = vcmask 326656  }
  0x19   :  { %113 = vrot.lane.b32.xlu1 %v106_v5, %s3876_s0  ;;  %3302 = vmatprep.subr.mxu1 %v35_v17  ;;  %s3888_s25 = smov 80   ;;  %s3889_s26 = smov 88   ;;  %vm966_vm9 = vcmask 392192   ;;  %vm968_vm10 = vcmask 457728   ;;  %vm970_vm11 = vcmask 523264   ;;  %vm972_vm12 = vcmask 588800  }
  0x1a   :  { %111 = vrot.lane.b32.xlu0 %v107_v14, %s3876_s0  ;;  %v3967_v28 = vsub.s32 %v144_v23, %v3963_v24  ;;  %vm974_vm13 = vcmask 654336   ;;  %vm976_vm14 = vcmask 719872   ;;  %vm982_vm15 = vcmask 785408  }
  0x1c   :  { %3303 = vmatpush3.msra.mxu1 %v35_v17 }
  0x1d   :  { %115 = vrot.lane.b32.xlu1 %v110_v18, %s3876_s0 }
  0x1e   :  { %96 = vrot.lane.b32.xlu0 %v91_v19, %s3875_s29 }
  0x21   :  { %117 = vrot.lane.b32.xlu1 %v109_v13, %s3876_s0  ;;  %v3117_v13 = vld [vmem:[%s4471_s3] ss:$0 sm:$0xff] }
  0x22   :  { %98 = vrot.lane.b32.xlu0 %v90_v16, %s3875_s29  ;;  %v208_v14 = vcombine.high %v3117_v13, %v3117_v13  ;;  %v215_v15 = vrot.slane %v3117_v13, %v3967_v28 }
  0x24   :  { %v222_v16 = vrot.slane %v208_v14, %v3967_v28  ;;  %v223_v17 = vcombine.high %v215_v15, %v215_v15 }
  0x26   :  { %v224_v18 = vcombine.high %v222_v16, %v222_v16  ;;  %v284_v19 = vcombine.low %v215_v15, %v223_v17  ;;  %v301_v20 = vcombine.low %v222_v16, %v215_v15 }
  0x28   :  { %v285_v21 = vcombine.low %v222_v16, %v224_v18  ;;  %v292_v22 = vrot.slane %v284_v19, %v3967_v28  ;;  %v308_v23 = vrot.slane %v301_v20, %v3967_v28 }
  0x87   :  { %v95_v25 = vpop.permute.xlu1 %94 }
  0x88   :  { %v93_v26 = vpop.permute.xlu0 %92  ;;  %v125_v27 = vsel %vm123_vm2, %v78_v0, %v95_v25  ;;  %v299_v25 = vrot.slane %v285_v21, %v3967_v28 }
  0x89   :  { %v124_v30 = vsel %vm123_vm2, %v77_v1, %v93_v26  ;;  %v310_v26 = vcombine.low %v223_v17, %v222_v16 }
  0x8b   :  { %v114_v29 = vpop.permute.xlu1 %113 }
  0x8c   :  { %v130_v31 = vsel %vm128_vm3, %v125_v27, %v114_v29  ;;  %v112_v32 = vpop.permute.xlu0 %111  ;;  %v311_v27 = vcombine.low %v224_v18, %v215_v15  ;;  %v309_v29 = vcombine.low %v292_v22, %v308_v23 }
  0x8d   :  { %v165_v33 = vrot.slane %v130_v31, %v3967_v28  ;;  %v129_v34 = vsel %vm128_vm3, %v124_v30, %v112_v32  ;;  %v158_v37 = vcombine.high %v130_v31, %v130_v31  ;;  %v300_v30 = vcombine.low %v292_v22, %v299_v25 }
  0x8e   :  { %v141_v35 = vcombine.high %v129_v34, %v129_v34  ;;  %v148_v36 = vrot.slane %v129_v34, %v3967_v28  ;;  %v318_v32 = vrot.slane %v310_v26, %v3967_v28  ;;  %v36_v26 = vld [vmem:[#allocation3 + $0x18] sm:$0xff] }
  0x8f   :  { %v173_v38 = vcombine.high %v165_v33, %v165_v33  ;;  %v116_v39 = vpop.permute.xlu1 %115  ;;  %v172_v47 = vrot.slane %v158_v37, %v3967_v28 }
  0x90   :  { %v155_v40 = vrot.slane %v141_v35, %v3967_v28  ;;  %v156_v41 = vcombine.high %v148_v36, %v148_v36  ;;  %v97_v42 = vpop.permute.xlu0 %96 }
  0x91   :  { %v126_v43 = vsel %vm123_vm2, %v79_v2, %v97_v42  ;;  %v242_v48 = vcombine.low %v165_v33, %v173_v38  ;;  %v325_v33 = vrot.slane %v311_v27, %v3967_v28  ;;  %v37_v27 = vld [vmem:[#allocation3 + $0x20] sm:$0xff] }
  0x92   :  { %v157_v44 = vcombine.high %v155_v40, %v155_v40  ;;  %v225_v45 = vcombine.low %v148_v36, %v156_v41  ;;  %v131_v46 = vsel %vm128_vm3, %v126_v43, %v116_v39 }
  0x93   :  { %v174_v49 = vcombine.high %v131_v46, %v131_v46  ;;  %v181_v50 = vrot.slane %v131_v46, %v3967_v28  ;;  %v118_v51 = vpop.permute.xlu1 %117  ;;  %v250_v61 = vrot.slane %v242_v48, %v3967_v28  ;;  %v326_v41 = vcombine.low %v318_v32, %v325_v33 }
  0x94   :  { %v99_v52 = vpop.permute.xlu0 %98  ;;  %v226_v53 = vcombine.low %v155_v40, %v157_v44  ;;  %v233_v59 = vrot.slane %v225_v45, %v3967_v28  ;;  %v3878_v44 = vmov 0.0|0.0  }
  0x95   :  { %v188_v54 = vrot.slane %v174_v49, %v3967_v28  ;;  %v189_v55 = vcombine.high %v181_v50, %v181_v50  ;;  %v243_v56 = vcombine.low %v172_v47, %v181_v50  ;;  %v127_v57 = vsel %vm123_vm2, %v3947_v7, %v99_v52  ;;  %3575 = vmatprep.subr.bf16.mxu1 %v3878_v44 }
  0x96   :  { %v132_v58 = vsel %vm128_vm3, %v127_v57, %v118_v51  ;;  %v240_v60 = vrot.slane %v226_v53, %v3967_v28  ;;  %3578 = vmatprep.subr.bf16.mxu0 %v3878_v44 }
  0x97   :  { %v257_v62 = vrot.slane %v243_v56, %v3967_v28  ;;  %v190_v63 = vcombine.high %v188_v54, %v188_v54  ;;  %v191_v0 = vcombine.high %v132_v58, %v132_v58  ;;  %v259_v1 = vcombine.low %v189_v55, %v188_v54 }
  0x98   :  { %v198_v2 = vrot.slane %v132_v58, %v3967_v28  ;;  %v241_v3 = vcombine.low %v233_v59, %v240_v60 }
  0x99   :  { %v205_v4 = vrot.slane %v191_v0, %v3967_v28  ;;  %v258_v5 = vcombine.low %v250_v61, %v257_v62  ;;  %v267_v8 = vrot.slane %v259_v1, %v3967_v28 }
  0x9a   :  { %v206_v6 = vcombine.high %v198_v2, %v198_v2  ;;  %v260_v7 = vcombine.low %v190_v63, %v198_v2  ;;  %3304 = vmatprep.mubr.msk.f32.mxu1 %vm331_vm4, %v241_v3 }
  0x9b   :  { %3305 = vmatmul.mubr.msk.f32.vlgmr.msra.gmra.mrb[0].mxu1 %vm331_vm4, %v258_v5 }
  0x9c   :  { %v274_v9 = vrot.slane %v260_v7, %v3967_v28  ;;  %v276_v10 = vcombine.low %v206_v6, %v205_v4 }
  0x9e   :  { %v275_v11 = vcombine.low %v267_v8, %v274_v9  ;;  %v283_v12 = vrot.slane %v276_v10, %v3967_v28 }
  0xa0   :  { %3307 = vmatprep.mubr.msk.f32.mxu1 %vm331_vm4, %v275_v11 }
  0xa1   :  { %3308 = vmatmul.mubr.msk.f32.gmra.mrb[2].mxu1 %vm331_vm4, %v283_v12 }
 0x16e   :  { %v3306_v31 = vpop.f32.mrb[0].mxu1 }
 0x16f   :  { %v412_v34 = vadd.f32 %v3306_v31, %v309_v29  ;;  %v406_v35 = vpop.f32.mrb[1].mxu1 }
 0x170   :  { %v407_v36 = vadd.f32 %v406_v35, %v300_v30  ;;  %v3576_v35 = vpack.c.bf16 %v37_v27, %v36_v26  ;;  %v41_v26 = vld [vmem:[#allocation3 + $0x40] sm:$0xff]  ;;  %v42_v27 = vld [vmem:[#allocation3 + $0x48] sm:$0xff] }
 0x171   :  { %v446_v37 = vcombine.high %v412_v34, %v412_v34  ;;  %v453_v38 = vrot.slane %v412_v34, %v3967_v28 }
 0x172   :  { %v429_v39 = vcombine.high %v407_v36, %v407_v36  ;;  %v436_v40 = vrot.slane %v407_v36, %v3967_v28  ;;  %3577 = vmatpush3.bf16.msra.mxu1 %v3576_v35  ;;  %v4096_v35 = vsub.s32 3, %v3963_v24 }
 0x173   :  { %v4009_v42 = vrot.slane %v446_v37, %v3967_v28  ;;  %v461_v43 = vcombine.high %v453_v38, %v453_v38  ;;  %v506_v45 = vmax.f32 %v453_v38, 0.0 }
 0x174   :  { %v443_v46 = vrot.slane %v429_v39, %v3967_v28  ;;  %v444_v47 = vcombine.high %v436_v40, %v436_v40  ;;  %v502_v48 = vmax.f32 %v436_v40, 0.0  ;;  %v3309_v49 = vpop.f32.mrb[2].mxu1 }
 0x175   :  { %v462_v50 = vcombine.high %v4009_v42, %v4009_v42  ;;  %v507_v51 = vmax.f32 %v461_v43, 0.0  ;;  %v508_v52 = vmax.f32 %v4009_v42, 0.0  ;;  %v422_v53 = vadd.f32 %v3309_v49, %v318_v32  ;;  %v416_v54 = vpop.f32.mrb[3].mxu1  ;;  %v38_v43 = vld [vmem:[#allocation3 + $0x28] sm:$0xff] }
 0x176   :  { %v445_v55 = vcombine.high %v443_v46, %v443_v46  ;;  %v503_v56 = vmax.f32 %v444_v47, 0.0  ;;  %v504_v57 = vmax.f32 %v443_v46, 0.0  ;;  %v417_v58 = vadd.f32 %v416_v54, %v326_v41 }
 0x177   :  { %v545_v59 = vcombine.low %v506_v45, %v507_v51  ;;  %v4018_v60 = vrot.slane %v422_v53, %v3967_v28  ;;  %v509_v1 = vmax.f32 %v462_v50, 0.0  ;;  %v590_v4 = vrot.slane %v508_v52, %v3967_v28 }
 0x178   :  { %v505_v61 = vmax.f32 %v445_v55, 0.0  ;;  %v528_v62 = vcombine.low %v502_v48, %v503_v56  ;;  %v618_v63 = vcombine.low %v503_v56, %v504_v57  ;;  %v463_v0 = vcombine.high %v417_v58, %v417_v58 }
 0x179   :  { %v470_v2 = vrot.slane %v417_v58, %v3967_v28  ;;  %v4022_v3 = vrot.slane %v545_v59, %v3967_v28  ;;  %v487_v6 = vcombine.high %v4018_v60, %v4018_v60  ;;  %v514_v17 = vmax.f32 %v4018_v60, 0.0 }
 0x17a   :  { %v529_v5 = vcombine.low %v504_v57, %v505_v61  ;;  %v477_v7 = vrot.slane %v463_v0, %v3967_v28  ;;  %v619_v8 = vcombine.low %v505_v61, %v506_v45  ;;  %v536_v9 = vrot.slane %v528_v62, %v3967_v28 }
 0x17b   :  { %v478_v10 = vcombine.high %v470_v2, %v470_v2  ;;  %v510_v11 = vmax.f32 %v470_v2, 0.0  ;;  %v626_v12 = vrot.slane %v618_v63, %v3967_v28  ;;  %v591_v20 = vcombine.low %v4022_v3, %v590_v4 }
 0x17c   :  { %v479_v13 = vcombine.high %v477_v7, %v477_v7  ;;  %v512_v14 = vmax.f32 %v477_v7, 0.0  ;;  %v633_v15 = vrot.slane %v619_v8, %v3967_v28  ;;  %v543_v16 = vrot.slane %v529_v5, %v3967_v28 }
 0x17d   :  { %v511_v18 = vmax.f32 %v478_v10, 0.0  ;;  %v553_v19 = vcombine.low %v509_v1, %v510_v11  ;;  %v515_v21 = vmax.f32 %v487_v6, 0.0  ;;  %v601_v32 = vrot.slane %v591_v20, 1 }
 0x17e   :  { %v513_v22 = vmax.f32 %v479_v13, 0.0  ;;  %v634_v23 = vcombine.low %v626_v12, %v633_v15  ;;  %v544_v25 = vcombine.low %v536_v9, %v543_v16  ;;  %v3879_v42 = vmov 0.0   ;;  %v39_v12 = vld [vmem:[#allocation3 + $0x30] sm:$0xff]  ;;  %v40_v13 = vld [vmem:[#allocation3 + $0x38] sm:$0xff]  ;;  %v3122_v15 = vld [vmem:[%s4471_s3 + $0x1] ss:$0 sm:$0xff] }
 0x17f   :  { %v554_v29 = vcombine.low %v511_v18, %v512_v14  ;;  %v561_v33 = vrot.slane %v553_v19, %v3967_v28  ;;  %v598_v36 = vrot.slane %v515_v21, %v3967_v28  ;;  %3314 = vmatprep.subr.mxu1 %v3879_v42  ;;  %3316 = vmatprep.mubr.msk.f32.mxu1 %vm3880_vm5, %v3879_v42 }
 0x180   :  { %v570_v30 = vcombine.low %v513_v22, %v514_v17  ;;  %668 = vrot.lane.b32.xlu1 %v634_v23, %s3876_s0  ;;  %v600_v31 = vrot.slane %v544_v25, 1  ;;  %v644_v40 = vcombine.low %v512_v14, %v513_v22  ;;  %v643_v45 = vcombine.low %v510_v11, %v511_v18  ;;  %3349 = vmatprep.mubr.msk.f32.mxu0 %vm3880_vm5, %v3879_v42 }
 0x181   :  { %v568_v34 = vrot.slane %v554_v29, %v3967_v28  ;;  %v635_v46 = vcombine.low %v507_v51, %v508_v52  ;;  %3315 = vmatpush3.msra.mxu1 %v38_v43  ;;  %v660_v54 = vcombine.low %v514_v17, %v515_v21  ;;  %v3579_v14 = vpack.c.bf16 %v40_v13, %v39_v12 }
 0x182   :  { %v602_v37 = vsel %vm85_vm0, %v600_v31, %v601_v32  ;;  %v577_v38 = vrot.slane %v570_v30, %v3967_v28  ;;  %v658_v49 = vrot.slane %v644_v40, %v3967_v28  ;;  %3596 = vmatprep.subr.bf16.mxu1 %v3878_v44  ;;  %v651_v51 = vrot.slane %v643_v45, %v3967_v28  ;;  %v44_v40 = vld [vmem:[#allocation3 + $0x58] sm:$0xff] }
 0x183   :  { %606 = vrot.lane.b32.xlu0 %v602_v37, %s3875_s29  ;;  %v569_v39 = vcombine.low %v561_v33, %v568_v34  ;;  %v642_v53 = vrot.slane %v635_v46, %v3967_v28  ;;  %v667_v55 = vrot.slane %v660_v54, %v3967_v28  ;;  %3580 = vmatpush3.bf16.msra.mxu0 %v3579_v14  ;;  %v4081_v21 = vsub.s32 0, %v3963_v24 }
 0x184   :  { %v599_v41 = vcombine.low %v577_v38, %v598_v36  ;;  %v659_v52 = vcombine.low %v651_v51, %v658_v49  ;;  %3581 = vmatprep.subr.bf16.mxu0 %v3878_v44  ;;  %v699_v16 = vcombine.high %v3122_v15, %v3122_v15  ;;  %v3582_v30 = vpack.c.bf16 %v42_v27, %v41_v26 }
 0x185   :  { %v603_v47 = vrot.slane %v569_v39, 1  ;;  %v4090_v33 = vsub.s32 2, %v3963_v24  ;;  %v4093_v34 = vsub.s32 1, %v3963_v24 }
 0x186   :  { %v604_v48 = vrot.slane %v599_v41, 1  ;;  %v703_v17 = vcombine.low %v3122_v15, %v699_v16 }
 0x187   :  { %608 = vrot.lane.b32.xlu0 %v601_v32, %s3875_s29  ;;  %3583 = vmatpush3.bf16.msra.mxu0 %v3582_v30  ;;  %v49_v30 = vld [vmem:[#allocation3 + $0x80] sm:$0xff] }
 0x188   :  { %v605_v50 = vsel %vm85_vm0, %v603_v47, %v604_v48  ;;  %3584 = vmatprep.subr.bf16.mxu0 %v3878_v44  ;;  %vm1134_vm0 = vcmask 254976  }
 0x189   :  { %610 = vrot.lane.b32.xlu1 %v605_v50, %s3875_s29 }
 0x18b   :  { %670 = vrot.lane.b32.xlu0 %v642_v53, %s3876_s0 }
 0x18d   :  { %672 = vrot.lane.b32.xlu1 %v659_v52, %s3876_s0 }
 0x18f   :  { %612 = vrot.lane.b32.xlu0 %v604_v48, %s3875_s29 }
 0x191   :  { %674 = vrot.lane.b32.xlu1 %v667_v55, %s3876_s0  ;;  %v45_v55 = vld [vmem:[#allocation3 + $0x60] sm:$0xff] }
 0x1f2   :  { %v669_v57 = vpop.permute.xlu1 %668 }
 0x1f5   :  { %v607_v56 = vpop.permute.xlu0 %606 }
 0x1f6   :  { %v680_v58 = vsel %vm123_vm2, %v544_v25, %v607_v56  ;;  %v704_v25 = vcombine.low %v3122_v15, %v3122_v15  ;;  %v46_v56 = vld [vmem:[#allocation3 + $0x68] sm:$0xff] }
 0x1f7   :  { %v684_v59 = vsel %vm128_vm3, %v680_v58, %v669_v57 }
 0x1f8   :  { %v696_v60 = vcombine.high %v684_v59, %v684_v59 }
 0x1f9   :  { %v609_v61 = vpop.permute.xlu0 %608 }
 0x1fa   :  { %v700_v62 = vcombine.low %v684_v59, %v696_v60  ;;  %v681_v0 = vsel %vm123_vm2, %v4022_v3, %v609_v61  ;;  %v3588_v60 = vpack.c.bf16 %v46_v56, %v45_v55 }
 0x1fb   :  { %v611_v63 = vpop.permute.xlu1 %610 }
 0x1fc   :  { %3317 = vmatmul.mubr.msk.f32.vlgmr.msra.gmra.mrb[4].mxu1 %vm331_vm4, %v700_v62  ;;  %v682_v2 = vsel %vm123_vm2, %v569_v39, %v611_v63  ;;  %v43_v39 = vld [vmem:[#allocation3 + $0x50] sm:$0xff] }
 0x1fd   :  { %v671_v1 = vpop.permute.xlu0 %670  ;;  %3319 = vmatprep.mubr.msk.f32.mxu1 %vm3880_vm5, %v3879_v42  ;;  %v3585_v41 = vpack.c.bf16 %v44_v40, %v43_v39 }
 0x1fe   :  { %v685_v28 = vsel %vm128_vm3, %v681_v0, %v671_v1 }
 0x1ff   :  { %v673_v4 = vpop.permute.xlu1 %672  ;;  %3586 = vmatpush3.bf16.msra.mxu0 %v3585_v41 }
 0x200   :  { %v686_v5 = vsel %vm128_vm3, %v682_v2, %v673_v4  ;;  %3587 = vmatprep.subr.bf16.mxu0 %v3878_v44 }
 0x201   :  { %v701_v6 = vcombine.low %v685_v28, %v686_v5  ;;  %v613_v7 = vpop.permute.xlu0 %612  ;;  %v697_v9 = vcombine.high %v686_v5, %v686_v5 }
 0x202   :  { %v683_v8 = vsel %vm123_vm2, %v577_v38, %v613_v7  ;;  %v705_v38 = vcombine.low %v699_v16, %v3122_v15  ;;  %v47_v15 = vld [vmem:[#allocation3 + $0x70] sm:$0xff]  ;;  %v48_v16 = vld [vmem:[#allocation3 + $0x78] sm:$0xff] }
 0x203   :  { %v675_v10 = vpop.permute.xlu1 %674  ;;  %3320 = vmatmul.mubr.msk.f32.gmra.mrb[6].mxu1 %vm331_vm4, %v701_v6  ;;  %3589 = vmatpush3.bf16.msra.mxu0 %v3588_v60 }
 0x204   :  { %v687_v3 = vsel %vm128_vm3, %v683_v8, %v675_v10  ;;  %3322 = vmatprep.mubr.msk.f32.mxu1 %vm3880_vm5, %v3879_v42  ;;  %3590 = vmatprep.subr.bf16.mxu0 %v3878_v44 }
 0x205   :  { %v702_v11 = vcombine.low %v697_v9, %v687_v3 }
 0x207   :  { %3323 = vmatmul.mubr.msk.f32.gmra.mrb[8].mxu1 %vm331_vm4, %v702_v11 }
 0x208   :  { %3360 = vmatprep.mubr.msk.f32.mxu1 %vm3880_vm5, %v3879_v42 }
 0x2cf   :  { %v781_v18 = vpop.f32.mrb[4].mxu1 }
 0x2d0   :  { %v782_v19 = vadd.f32 %v781_v18, %v703_v17  ;;  %v3318_v20 = vpop.f32.mrb[5].mxu1 }
 0x2d2   :  { %v798_v22 = vcombine.high %v782_v19, %v782_v19  ;;  %v4083_v23 = vmax.f32 %v782_v19, 0.0 }
 0x2d4   :  { %v815_v29 = vrot.slane %v4083_v23, %v4081_v21  ;;  %v4087_v31 = vmax.f32 %v798_v22, 0.0  ;;  %v838_v47 = vrot.slane %v4083_v23, %v4090_v33  ;;  %v826_v24 = vrot.slane %v4083_v23, %v4093_v34 }
 0x2d5   :  { %v850_v48 = vrot.slane %v4083_v23, %v4096_v35  ;;  %v52_v23 = vld [vmem:[#allocation3 + $0x98] sm:$0xff] }
 0x2d6   :  { %v786_v32 = vpop.f32.mrb[6].mxu1  ;;  %v864_v49 = vrot.slane %v4087_v31, %v4081_v21  ;;  %v876_v52 = vrot.slane %v4087_v31, %v4093_v34  ;;  %v888_v54 = vrot.slane %v4087_v31, %v4090_v33  ;;  %v900_v57 = vrot.slane %v4087_v31, %v4096_v35  ;;  %v50_v31 = vld [vmem:[#allocation3 + $0x88] sm:$0xff] }
 0x2d7   :  { %v787_v36 = vadd.f32 %v786_v32, %v704_v25  ;;  %v3321_v37 = vpop.f32.mrb[7].mxu1 }
 0x2d8   :  { %v54_v37 = vld [vmem:[#allocation3 + $0xa8] sm:$0xff] }
 0x2d9   :  { %v799_v43 = vcombine.high %v787_v36, %v787_v36  ;;  %v806_v45 = vmax.f32 %v787_v36, 0.0 }
 0x2da   :  { %v791_v46 = vpop.f32.mrb[8].mxu1 }
 0x2db   :  { %v807_v50 = vmax.f32 %v799_v43, 0.0  ;;  %v792_v53 = vadd.f32 %v791_v46, %v705_v38  ;;  %v3324_v51 = vpop.f32.mrb[9].mxu1  ;;  %v914_v58 = vrot.slane %v806_v45, %v4081_v21  ;;  %v926_v59 = vrot.slane %v806_v45, %v4093_v34 }
 0x2dc   :  { %v938_v28 = vrot.slane %v806_v45, %v4090_v33  ;;  %v950_v2 = vrot.slane %v806_v45, %v4096_v35 }
 0x2dd   :  { %v800_v61 = vcombine.high %v792_v53, %v792_v53  ;;  %v808_v62 = vmax.f32 %v792_v53, 0.0  ;;  %v842_v63 = vrot.slane %v807_v50, %v4090_v33  ;;  %v830_v0 = vrot.slane %v807_v50, %v4093_v34 }
 0x2de   :  { %v854_v1 = vrot.slane %v807_v50, %v4096_v35  ;;  %v819_v4 = vrot.slane %v807_v50, %v4081_v21 }
 0x2df   :  { %v809_v5 = vmax.f32 %v800_v61, 0.0  ;;  %v843_v6 = vsel %vm820_vm6, %v842_v63, %v838_v47  ;;  %v831_v7 = vsel %vm820_vm6, %v830_v0, %v826_v24  ;;  %v868_v8 = vrot.slane %v808_v62, %v4081_v21 }
 0x2e0   :  { %844 = vrot.lane.b32.xlu1 %v843_v6, %s3876_s0  ;;  %832 = vrot.lane.b32.xlu0 %v831_v7, %s3875_s29  ;;  %v855_v9 = vsel %vm820_vm6, %v854_v1, %v850_v48  ;;  %v880_v10 = vrot.slane %v808_v62, %v4093_v34  ;;  %v892_v3 = vrot.slane %v808_v62, %v4090_v33  ;;  %s3891_s0 = smov 96  }
 0x2e1   :  { %v869_v11 = vsel %vm820_vm6, %v868_v8, %v864_v49  ;;  %v904_v12 = vrot.slane %v808_v62, %v4096_v35  ;;  %v918_v13 = vrot.slane %v809_v5, %v4081_v21  ;;  %v930_v14 = vrot.slane %v809_v5, %v4093_v34  ;;  %v51_v21 = vld [vmem:[#allocation3 + $0x90] sm:$0xff]  ;;  %v3126_v62 = vld [vmem:[%s4471_s3 + $0x2] ss:$0 sm:$0xff] }
 0x2e2   :  { %v881_v17 = vsel %vm820_vm6, %v880_v10, %v876_v52  ;;  %v893_v18 = vsel %vm820_vm6, %v892_v3, %v888_v54  ;;  %v942_v19 = vrot.slane %v809_v5, %v4090_v33  ;;  %v954_v20 = vrot.slane %v809_v5, %v4096_v35  ;;  %v56_v10 = vld [vmem:[#allocation3 + $0xb8] sm:$0xff] }
 0x2e3   :  { %v905_v22 = vsel %vm820_vm6, %v904_v12, %v900_v57  ;;  %v919_v25 = vsel %vm820_vm6, %v918_v13, %v914_v58  ;;  %v931_v26 = vsel %vm820_vm6, %v930_v14, %v926_v59  ;;  %v821_v27 = vsel %vm820_vm6, %v819_v4, %v815_v29  ;;  %v53_v29 = vld [vmem:[#allocation3 + $0xa0] sm:$0xff]  ;;  %v62_v12 = vld [vmem:[#allocation3 + $0xe8] sm:$0xff]  ;;  %v63_v13 = vld [vmem:[#allocation3 + $0xf0] sm:$0xff] }
 0x2e4   :  { %856 = vrot.lane.b32.xlu0 %v855_v9, %s3881_s18  ;;  %870 = vrot.lane.b32.xlu1 %v869_v11, %s3882_s19  ;;  %v943_v32 = vsel %vm820_vm6, %v942_v19, %v938_v28  ;;  %v955_v33 = vsel %vm820_vm6, %v954_v20, %v950_v2  ;;  %v3591_v34 = vpack.c.bf16 %v48_v16, %v47_v15  ;;  %v3128_v2 = vld [vmem:[%s4471_s3 + $0x3] ss:$0 sm:$0xff]  ;;  %v55_v9 = vld [vmem:[#allocation3 + $0xb0] sm:$0xff]  ;;  %v64_v15 = vld [vmem:[#allocation3 + $0xf8] sm:$0xff] }
 0x2e5   :  { %v3594_v35 = vpack.c.bf16 %v50_v31, %v49_v30  ;;  %v3597_v36 = vpack.c.bf16 %v52_v23, %v51_v21  ;;  %v3600_v38 = vpack.c.bf16 %v54_v37, %v53_v29  ;;  %v3603_v3 = vpack.c.bf16 %v56_v10, %v55_v9  ;;  %v61_v11 = vld [vmem:[#allocation3 + $0xe0] sm:$0xff]  ;;  %v59_v31 = vld [vmem:[#allocation3 + $0xd0] sm:$0xff] }
 0x2e6   :  { %3592 = vmatpush3.bf16.msra.mxu0 %v3591_v34  ;;  %v4172_v14 = vpack.c.bf16 %v62_v12, %v61_v11  ;;  %v4176_v16 = vpack.c.bf16 %v64_v15, %v63_v13  ;;  %v57_v20 = vld [vmem:[#allocation3 + $0xc0] sm:$0xff] }
 0x2e7   :  { %3593 = vmatprep.subr.bf16.mxu0 %v3878_v44  ;;  %3598 = vmatpush3.bf16.msra.mxu1 %v3597_v36  ;;  %v4199_v34 = vld [vmem:[%s4471_s3 + $0x6] ss:$0 sm:$0xff]  ;;  %v3130_v29 = vld [vmem:[%s4471_s3 + $0x4] ss:$0 sm:$0xff] }
 0x2e8   :  { %882 = vrot.lane.b32.xlu0 %v881_v17, %s3883_s20  ;;  %894 = vrot.lane.b32.xlu1 %v893_v18, %s3884_s21  ;;  %v1136_v18 = vld [vmem:[%s4469_s1] sm:$0x3] }
 0x2e9   :  { %3599 = vmatprep.subr.bf16.mxu1 %v3878_v44  ;;  %v1137_v19 = vmul.f32 0.01, %v1136_v18 }
 0x2ea   :  { %3595 = vmatpush3.bf16.msra.mxu0 %v3594_v35 }
 0x2eb   :  { %3611 = vmatprep.subr.bf16.mxu0 %v3878_v44  ;;  %3601 = vmatpush3.bf16.msra.mxu1 %v3600_v38 }
 0x2ec   :  { %906 = vrot.lane.b32.xlu0 %v905_v22, %s3885_s22  ;;  %920 = vrot.lane.b32.xlu1 %v919_v25, %s3886_s23  ;;  %v58_v22 = vld [vmem:[#allocation3 + $0xc8] sm:$0xff] }
 0x2ed   :  { %3602 = vmatprep.subr.bf16.mxu1 %v3878_v44 }
 0x2f0   :  { %932 = vrot.lane.b32.xlu0 %v931_v26, %s3887_s24  ;;  %944 = vrot.lane.b32.xlu1 %v943_v32, %s3888_s25  ;;  %v60_v32 = vld [vmem:[#allocation3 + $0xd8] sm:$0xff] }
 0x2f4   :  { %956 = vrot.lane.b32.xlu0 %v955_v33, %s3889_s26  ;;  %v3609_v33 = vpack.c.bf16 %v60_v32, %v59_v31 }
 0x352   :  { %v845_v39 = vpop.permute.xlu1 %844  ;;  %v833_v40 = vpop.permute.xlu0 %832 }
 0x353   :  { %v959_v41 = vsel %vm123_vm2, %v821_v27, %v833_v40  ;;  %v3606_v27 = vpack.c.bf16 %v58_v22, %v57_v20  ;;  %v3132_v40 = vld [vmem:[%s4471_s3 + $0x5] ss:$0 sm:$0xff] }
 0x354   :  { %v960_v45 = vsel %vm128_vm3, %v959_v41, %v845_v39 }
 0x356   :  { %v871_v43 = vpop.permute.xlu1 %870  ;;  %v857_v46 = vpop.permute.xlu0 %856 }
 0x357   :  { %v961_v47 = vsel %vm331_vm4, %v960_v45, %v857_v46 }
 0x358   :  { %v963_v48 = vsel %vm962_vm7, %v961_v47, %v871_v43 }
 0x35a   :  { %v895_v24 = vpop.permute.xlu1 %894  ;;  %v883_v49 = vpop.permute.xlu0 %882 }
 0x35b   :  { %v965_v50 = vsel %vm964_vm8, %v963_v48, %v883_v49 }
 0x35c   :  { %v967_v51 = vsel %vm966_vm9, %v965_v50, %v895_v24 }
 0x35e   :  { %v921_v53 = vpop.permute.xlu1 %920  ;;  %v907_v52 = vpop.permute.xlu0 %906 }
 0x35f   :  { %v969_v54 = vsel %vm968_vm10, %v967_v51, %v907_v52 }
 0x360   :  { %v971_v55 = vsel %vm970_vm11, %v969_v54, %v921_v53 }
 0x362   :  { %v933_v56 = vpop.permute.xlu0 %932  ;;  %v945_v57 = vpop.permute.xlu1 %944 }
 0x363   :  { %v973_v58 = vsel %vm972_vm12, %v971_v55, %v933_v56 }
 0x364   :  { %v975_v59 = vsel %vm974_vm13, %v973_v58, %v945_v57 }
 0x366   :  { %v957_v60 = vpop.permute.xlu0 %956 }
 0x367   :  { %v977_v61 = vsel %vm976_vm14, %v975_v59, %v957_v60 }
 0x368   :  { %3350 = vmatmul.mubr.msk.f32.vlgmr.msra.gmra.mrb[0].mxu0 %vm982_vm15, %v977_v61 }
 0x369   :  { %3389 = vmatprep.mubr.msk.f32.mxu0 %vm3880_vm5, %v3879_v42  ;;  %3613 = vmatpush3.bf16.msra.mxu0 %v4172_v14 }
 0x36a   :  { %3614 = vmatprep.subr.bf16.mxu0 %v3878_v44 }
 0x36d   :  { %3616 = vmatpush3.bf16.msra.mxu0 %v4176_v16 }
 0x36e   :  { %3623 = vmatprep.subr.bf16.mxu0 %v3878_v44 }
 0x370   :  { %3390 = vmatmul.mubr.f32.vlgmr.msra.gmra.mrb[2].mxu0 %v3879_v42 }
 0x371   :  { %3625 = vmatpush3.bf16.msra.mxu0 %v4172_v14  ;;  %3411 = vmatprep.mubr.msk.f32.mxu0 %vm3880_vm5, %v3879_v42 }
 0x372   :  { %3626 = vmatprep.subr.bf16.mxu0 %v3878_v44 }
 0x375   :  { %3628 = vmatpush3.bf16.msra.mxu0 %v4176_v16 }
 0x376   :  { %3635 = vmatprep.subr.bf16.mxu0 %v3878_v44 }
 0x43b   :  { %v1052_v63 = vpop.f32.mrb[0].mxu0 }
 0x43c   :  { %v1053_v0 = vadd.f32 %v3126_v62, %v1052_v63  ;;  %v3351_v1 = vpop.f32.mrb[1].mxu0 }
 0x43e   :  { %v1056_v28 = vmax.f32 %v1053_v0, 0.0 }
 0x440   :  { %3361 = vmatmul.mubr.msk.f32.vlgmr.msra.gmra.mrb[10].mxu1 %vm962_vm7, %v1056_v28 }
 0x441   :  { %3367 = vmatprep.mubr.msk.f32.mxu1 %vm3880_vm5, %v3879_v42  ;;  %3604 = vmatpush3.bf16.msra.mxu1 %v3603_v3 }
 0x442   :  { %3605 = vmatprep.subr.bf16.mxu1 %v3878_v44 }
 0x443   :  { %v1375_v35 = vpop.f32.mrb[2].mxu0 }
 0x444   :  { %v1376_v21 = vadd.f32 %v4199_v34, %v1375_v35  ;;  %v3391_v23 = vpop.f32.mrb[3].mxu0 }
 0x446   :  { %1387 = vrot.lane.b32.xlu0 %v1376_v21, %s3886_s23 }
 0x4b8   :  { %v1388_v49 = vpop.permute.xlu0 %1387 }
 0x513   :  { %v1130_v4 = vpop.f32.mrb[10].mxu1 }
 0x514   :  { %v1131_v5 = vadd.f32 %v3128_v2, %v1130_v4  ;;  %v3362_v6 = vpop.f32.mrb[11].mxu1 }
 0x516   :  { %1135 = vst.msk [vmem:[%s4473_s5] sm:$0x3] %vm1134_vm0, %v1131_v5  ;;  %v1138_v7 = vmul.f32 0.5, %v1131_v5  ;;  %s3890_s5 = smov 112  }
 0x518   :  { %v1139_v8 = vmul.f32 1.442695, %v1138_v7 }
 0x51a   :  { %3734 = vpow2.f32 %v1139_v8 }
 0x524   :  { %v3735_v17 = vpop.eup %3734 }
 0x525   :  { %1142 = vrot.lane.b32.xlu1 %v3735_v17, %s3890_s5 }
 0x597   :  { %v1143_v25 = vpop.permute.xlu1 %1142 }
 0x598   :  { %v1145_v26 = vmul.f32 %v1143_v25, %v1137_v19 }
 0x59a   :  { %v1146_v30 = vadd.f32 %v1145_v26, %v1131_v5 }
 0x59c   :  { %3368 = vmatmul.mubr.msk.f32.vlgmr.msra.gmra.mrb[12].mxu1 %vm128_vm3, %v1146_v30 }
 0x59d   :  { %3607 = vmatpush3.bf16.msra.mxu1 %v3606_v27  ;;  %3378 = vmatprep.mubr.msk.f32.mxu1 %vm3880_vm5, %v3879_v42 }
 0x59e   :  { %3608 = vmatprep.subr.bf16.mxu1 %v3878_v44 }
 0x5a1   :  { %3610 = vmatpush3.bf16.msra.mxu1 %v3609_v33 }
 0x5a2   :  { %3617 = vmatprep.subr.bf16.mxu1 %v3878_v44 }
 0x66f   :  { %v1220_v36 = vpop.f32.mrb[12].mxu1 }
 0x670   :  { %v1221_v37 = vadd.f32 %v3130_v29, %v1220_v36  ;;  %v3369_v38 = vpop.f32.mrb[13].mxu1 }
 0x672   :  { %v1224_v39 = vmax.f32 %v1221_v37, 0.0 }
 0x674   :  { %3379 = vmatmul.mubr.msk.f32.vlgmr.msra.gmra.mrb[14].mxu1 %vm962_vm7, %v1224_v39 }
 0x675   :  { %3619 = vmatpush3.bf16.msra.mxu1 %v4172_v14  ;;  %3400 = vmatprep.mubr.msk.f32.mxu1 %vm3880_vm5, %v3879_v42 }
 0x676   :  { %3620 = vmatprep.subr.bf16.mxu1 %v3878_v44 }
 0x679   :  { %3622 = vmatpush3.bf16.msra.mxu1 %v4176_v16 }
 0x67a   :  { %3629 = vmatprep.subr.bf16.mxu1 %v3878_v44 }
 0x747   :  { %v1298_v41 = vpop.f32.mrb[14].mxu1 }
 0x748   :  { %v4216_v43 = vadd.f32 %v3132_v40, %v1298_v41  ;;  %v3380_v45 = vpop.f32.mrb[15].mxu1 }
 0x74a   :  { %v1379_v46 = vadd.f32 %v1376_v21, %v4216_v43 }
 0x74c   :  { %v3135_v47 = vmul.f32 -1.442695, %v1379_v46 }
 0x74e   :  { %3736 = vpow2.f32 %v3135_v47 }
 0x758   :  { %v3737_v24 = vpop.eup %3736 }
 0x759   :  { %v1383_v48 = vadd.f32 1.0, %v3737_v24 }
 0x75b   :  { %3738 = vrcp.f32 %v1383_v48 }
 0x765   :  { %v3739_v50 = vpop.eup %3738 }
 0x766   :  { %v1390_v53 = vmul.f32 %v3739_v50, %v1388_v49  ;;  %v1397_v55 = vsub.f32 1.0, %v3739_v50  ;;  %v1403_v57 = vmul.f32 0.0, %v3739_v50 }
 0x768   :  { %1392 = vrot.lane.b32.xlu1 %v1390_v53, %s3886_s23 }
 0x7da   :  { %v1393_v51 = vpop.permute.xlu1 %1392 }
 0x7db   :  { %v1395_v52 = vadd.f32 %v1393_v51, %v4216_v43 }
 0x7dd   :  { %3740 = vtanh.f32 %v1395_v52 }
 0x7e7   :  { %v3741_v54 = vpop.eup %3740 }
 0x7e8   :  { %1399 = vrot.lane.b32.xlu0 %v3741_v54, %s3891_s0 }
 0x85a   :  { %v1400_v56 = vpop.permute.xlu0 %1399 }
 0x85b   :  { %v1402_v58 = vmul.f32 %v1400_v56, %v1397_v55 }
 0x85d   :  { %v1404_v59 = vadd.f32 %v1403_v57, %v1402_v58 }
 0x85f   :  { %1406 = vrot.lane.b32.xlu1 %v1404_v59, %s3891_s0 }
 0x8d1   :  { %v1407_v60 = vpop.permute.xlu1 %1406 }
 0x8d2   :  { %1409 = vst.msk [vmem:[#allocation2] sm:$0x3] %vm1134_vm0, %v1407_v60  ;;  %3401 = vmatmul.mubr.msk.f32.vlgmr.msra.gmra.mrb[16].mxu1 %vm962_vm7, %v1407_v60 }
 0x8d3   :  { %3631 = vmatpush3.bf16.msra.mxu1 %v4172_v14  ;;  %3422 = vmatprep.mubr.msk.f32.mxu1 %vm3880_vm5, %v3879_v42 }
 0x8d4   :  { %3632 = vmatprep.subr.bf16.mxu1 %v3878_v44 }
 0x8d7   :  { %3634 = vmatpush3.bf16.msra.mxu1 %v4176_v16 }
 0x8d8   :  { %3641 = vmatprep.subr.bf16.mxu1 %v3878_v44 }
 0x9a5   :  { %v1478_v61 = vpop.f32.mrb[16].mxu1 }
 0x9a6   :  { %v1479_v62 = vadd.f32 %v4199_v34, %v1478_v61  ;;  %v3402_v63 = vpop.f32.mrb[17].mxu1 }
 0x9a8   :  { %1490 = vrot.lane.b32.xlu0 %v1479_v62, %s3886_s23  ;;  %v1482_v0 = vadd.f32 %v1479_v62, %v4216_v43 }
 0x9aa   :  { %v3137_v1 = vmul.f32 -1.442695, %v1482_v0 }
 0x9ac   :  { %3742 = vpow2.f32 %v3137_v1 }
 0x9b6   :  { %v3743_v28 = vpop.eup %3742 }
 0x9b7   :  { %v1486_v2 = vadd.f32 1.0, %v3743_v28 }
 0x9b9   :  { %3744 = vrcp.f32 %v1486_v2 }
 0x9c3   :  { %v3745_v4 = vpop.eup %3744 }
 0x9c4   :  { %v1500_v10 = vsub.f32 1.0, %v3745_v4  ;;  %v1506_v11 = vmul.f32 %v3745_v4, %v1404_v59 }
 0xa1a   :  { %v1491_v5 = vpop.permute.xlu0 %1490 }
 0xa1b   :  { %v1493_v6 = vmul.f32 %v3745_v4, %v1491_v5 }
 0xa1d   :  { %1495 = vrot.lane.b32.xlu1 %v1493_v6, %s3886_s23 }
 0xa8f   :  { %v1496_v7 = vpop.permute.xlu1 %1495 }
 0xa90   :  { %v1498_v8 = vadd.f32 %v1496_v7, %v4216_v43 }
 0xa92   :  { %3746 = vtanh.f32 %v1498_v8 }
 0xa9c   :  { %v3747_v9 = vpop.eup %3746 }
 0xa9d   :  { %1502 = vrot.lane.b32.xlu0 %v3747_v9, %s3891_s0 }
 0xb0f   :  { %v1503_v3 = vpop.permute.xlu0 %1502 }
 0xb10   :  { %v1505_v12 = vmul.f32 %v1503_v3, %v1500_v10 }
 0xb12   :  { %v1507_v13 = vadd.f32 %v1506_v11, %v1505_v12 }
 0xb14   :  { %1509 = vrot.lane.b32.xlu1 %v1507_v13, %s3891_s0 }
 0xb86   :  { %v1510_v15 = vpop.permute.xlu1 %1509 }
 0xb87   :  { %1512 = vst.msk [vmem:[#allocation2 + $0x2] sm:$0x3] %vm1134_vm0, %v1510_v15  ;;  %3412 = vmatmul.mubr.msk.f32.vlgmr.msra.gmra.mrb[4].mxu0 %vm962_vm7, %v1510_v15 }
 0xb88   :  { %3637 = vmatpush3.bf16.msra.mxu0 %v4172_v14  ;;  %3433 = vmatprep.mubr.msk.f32.mxu0 %vm3880_vm5, %v3879_v42 }
 0xb89   :  { %3638 = vmatprep.subr.bf16.mxu0 %v3878_v44 }
 0xb8c   :  { %3640 = vmatpush3.bf16.msra.mxu0 %v4176_v16 }
 0xb8d   :  { %3647 = vmatprep.subr.bf16.mxu0 %v3878_v44 }
 0xc5a   :  { %v1581_v17 = vpop.f32.mrb[4].mxu0 }
 0xc5b   :  { %v1582_v18 = vadd.f32 %v4199_v34, %v1581_v17  ;;  %v3413_v19 = vpop.f32.mrb[5].mxu0 }
 0xc5d   :  { %1593 = vrot.lane.b32.xlu0 %v1582_v18, %s3886_s23  ;;  %v1585_v20 = vadd.f32 %v1582_v18, %v4216_v43 }
 0xc5f   :  { %v3139_v22 = vmul.f32 -1.442695, %v1585_v20 }
 0xc61   :  { %3748 = vpow2.f32 %v3139_v22 }
 0xc6b   :  { %v3749_v25 = vpop.eup %3748 }
 0xc6c   :  { %v1589_v26 = vadd.f32 1.0, %v3749_v25 }
 0xc6e   :  { %3750 = vrcp.f32 %v1589_v26 }
 0xc78   :  { %v3751_v27 = vpop.eup %3750 }
 0xc79   :  { %v1603_v21 = vsub.f32 1.0, %v3751_v27  ;;  %v1609_v29 = vmul.f32 %v3751_v27, %v1507_v13 }
 0xccf   :  { %v1594_v30 = vpop.permute.xlu0 %1593 }
 0xcd0   :  { %v1596_v31 = vmul.f32 %v3751_v27, %v1594_v30 }
 0xcd2   :  { %1598 = vrot.lane.b32.xlu1 %v1596_v31, %s3886_s23 }
 0xd44   :  { %v1599_v32 = vpop.permute.xlu1 %1598 }
 0xd45   :  { %v1601_v33 = vadd.f32 %v1599_v32, %v4216_v43 }
 0xd47   :  { %3752 = vtanh.f32 %v1601_v33 }
 0xd51   :  { %v3753_v35 = vpop.eup %3752 }
 0xd52   :  { %1605 = vrot.lane.b32.xlu0 %v3753_v35, %s3891_s0 }
 0xdc4   :  { %v1606_v23 = vpop.permute.xlu0 %1605 }
 0xdc5   :  { %v1608_v36 = vmul.f32 %v1606_v23, %v1603_v21 }
 0xdc7   :  { %v1610_v37 = vadd.f32 %v1609_v29, %v1608_v36 }
 0xdc9   :  { %1612 = vrot.lane.b32.xlu1 %v1610_v37, %s3891_s0 }
 0xe3b   :  { %v1613_v38 = vpop.permute.xlu1 %1612 }
 0xe3c   :  { %1615 = vst.msk [vmem:[#allocation2 + $0x4] sm:$0x3] %vm1134_vm0, %v1613_v38  ;;  %3423 = vmatmul.mubr.msk.f32.vlgmr.msra.gmra.mrb[18].mxu1 %vm962_vm7, %v1613_v38 }
 0xe3d   :  { %3643 = vmatpush3.bf16.msra.mxu1 %v4172_v14  ;;  %3444 = vmatprep.mubr.msk.f32.mxu1 %vm3880_vm5, %v3879_v42 }
 0xe3e   :  { %3644 = vmatprep.subr.bf16.mxu1 %v3878_v44 }
 0xe41   :  { %3646 = vmatpush3.bf16.msra.mxu1 %v4176_v16 }
 0xe42   :  { %3653 = vmatprep.subr.bf16.mxu1 %v3878_v44 }
 0xf0f   :  { %v1684_v39 = vpop.f32.mrb[18].mxu1 }
 0xf10   :  { %v1685_v40 = vadd.f32 %v4199_v34, %v1684_v39  ;;  %v3424_v41 = vpop.f32.mrb[19].mxu1 }
 0xf12   :  { %1696 = vrot.lane.b32.xlu0 %v1685_v40, %s3886_s23  ;;  %v1688_v45 = vadd.f32 %v1685_v40, %v4216_v43 }
 0xf14   :  { %v3141_v46 = vmul.f32 -1.442695, %v1688_v45 }
 0xf16   :  { %3754 = vpow2.f32 %v3141_v46 }
 0xf20   :  { %v3755_v47 = vpop.eup %3754 }
 0xf21   :  { %v1692_v24 = vadd.f32 1.0, %v3755_v47 }
 0xf23   :  { %3756 = vrcp.f32 %v1692_v24 }
 0xf2d   :  { %v3757_v48 = vpop.eup %3756 }
 0xf2e   :  { %v1706_v54 = vsub.f32 1.0, %v3757_v48  ;;  %v1712_v56 = vmul.f32 %v3757_v48, %v1610_v37 }
 0xf84   :  { %v1697_v49 = vpop.permute.xlu0 %1696 }
 0xf85   :  { %v1699_v50 = vmul.f32 %v3757_v48, %v1697_v49 }
 0xf87   :  { %1701 = vrot.lane.b32.xlu1 %v1699_v50, %s3886_s23 }
 0xff9   :  { %v1702_v53 = vpop.permute.xlu1 %1701 }
 0xffa   :  { %v1704_v51 = vadd.f32 %v1702_v53, %v4216_v43 }
 0xffc   :  { %3758 = vtanh.f32 %v1704_v51 }
0x1006   :  { %v3759_v52 = vpop.eup %3758 }
0x1007   :  { %1708 = vrot.lane.b32.xlu0 %v3759_v52, %s3891_s0 }
0x1079   :  { %v1709_v55 = vpop.permute.xlu0 %1708 }
0x107a   :  { %v1711_v57 = vmul.f32 %v1709_v55, %v1706_v54 }
0x107c   :  { %v1713_v58 = vadd.f32 %v1712_v56, %v1711_v57 }
0x107e   :  { %1715 = vrot.lane.b32.xlu1 %v1713_v58, %s3891_s0 }
0x10f0   :  { %v1716_v59 = vpop.permute.xlu1 %1715 }
0x10f1   :  { %1718 = vst.msk [vmem:[#allocation2 + $0x6] sm:$0x3] %vm1134_vm0, %v1716_v59  ;;  %3434 = vmatmul.mubr.msk.f32.vlgmr.msra.gmra.mrb[6].mxu0 %vm962_vm7, %v1716_v59 }
0x10f2   :  { %3649 = vmatpush3.bf16.msra.mxu0 %v4172_v14  ;;  %3455 = vmatprep.mubr.msk.f32.mxu0 %vm3880_vm5, %v3879_v42 }
0x10f3   :  { %3650 = vmatprep.subr.bf16.mxu0 %v3878_v44 }
0x10f6   :  { %3652 = vmatpush3.bf16.msra.mxu0 %v4176_v16 }
0x10f7   :  { %3659 = vmatprep.subr.bf16.mxu0 %v3878_v44 }
0x11c4   :  { %v1787_v60 = vpop.f32.mrb[6].mxu0 }
0x11c5   :  { %v1788_v61 = vadd.f32 %v4199_v34, %v1787_v60  ;;  %v3435_v62 = vpop.f32.mrb[7].mxu0 }
0x11c7   :  { %1799 = vrot.lane.b32.xlu0 %v1788_v61, %s3886_s23  ;;  %v1791_v63 = vadd.f32 %v1788_v61, %v4216_v43 }
0x11c9   :  { %v3143_v0 = vmul.f32 -1.442695, %v1791_v63 }
0x11cb   :  { %3760 = vpow2.f32 %v3143_v0 }
0x11d5   :  { %v3761_v1 = vpop.eup %3760 }
0x11d6   :  { %v1795_v28 = vadd.f32 1.0, %v3761_v1 }
0x11d8   :  { %3762 = vrcp.f32 %v1795_v28 }
0x11e2   :  { %v3763_v2 = vpop.eup %3762 }
0x11e3   :  { %v1809_v9 = vsub.f32 1.0, %v3763_v2  ;;  %v1815_v3 = vmul.f32 %v3763_v2, %v1713_v58 }
0x1239   :  { %v1800_v4 = vpop.permute.xlu0 %1799 }
0x123a   :  { %v1802_v5 = vmul.f32 %v3763_v2, %v1800_v4 }
0x123c   :  { %1804 = vrot.lane.b32.xlu1 %v1802_v5, %s3886_s23 }
0x12ae   :  { %v1805_v6 = vpop.permute.xlu1 %1804 }
0x12af   :  { %v1807_v7 = vadd.f32 %v1805_v6, %v4216_v43 }
0x12b1   :  { %3764 = vtanh.f32 %v1807_v7 }
0x12bb   :  { %v3765_v8 = vpop.eup %3764 }
0x12bc   :  { %1811 = vrot.lane.b32.xlu0 %v3765_v8, %s3891_s0 }
0x132e   :  { %v1812_v10 = vpop.permute.xlu0 %1811 }
0x132f   :  { %v1814_v11 = vmul.f32 %v1812_v10, %v1809_v9 }
0x1331   :  { %v1816_v12 = vadd.f32 %v1815_v3, %v1814_v11 }
0x1333   :  { %1818 = vrot.lane.b32.xlu1 %v1816_v12, %s3891_s0 }
0x13a5   :  { %v1819_v13 = vpop.permute.xlu1 %1818 }
0x13a6   :  { %1821 = vst.msk [vmem:[#allocation2 + $0x8] sm:$0x3] %vm1134_vm0, %v1819_v13  ;;  %3445 = vmatmul.mubr.msk.f32.vlgmr.msra.gmra.mrb[20].mxu1 %vm962_vm7, %v1819_v13 }
0x13a7   :  { %3655 = vmatpush3.bf16.msra.mxu1 %v4172_v14  ;;  %3466 = vmatprep.mubr.msk.f32.mxu1 %vm3880_vm5, %v3879_v42 }
0x13a8   :  { %3656 = vmatprep.subr.bf16.mxu1 %v3878_v44 }
0x13ab   :  { %3658 = vmatpush3.bf16.msra.mxu1 %v4176_v16 }
0x13ac   :  { %3665 = vmatprep.subr.bf16.mxu1 %v3878_v44 }
0x1479   :  { %v1890_v15 = vpop.f32.mrb[20].mxu1 }
0x147a   :  { %v1891_v17 = vadd.f32 %v4199_v34, %v1890_v15  ;;  %v3446_v18 = vpop.f32.mrb[21].mxu1 }
0x147c   :  { %1902 = vrot.lane.b32.xlu0 %v1891_v17, %s3886_s23  ;;  %v1894_v19 = vadd.f32 %v1891_v17, %v4216_v43 }
0x147e   :  { %v3145_v20 = vmul.f32 -1.442695, %v1894_v19 }
0x1480   :  { %3766 = vpow2.f32 %v3145_v20 }
0x148a   :  { %v3767_v22 = vpop.eup %3766 }
0x148b   :  { %v1898_v25 = vadd.f32 1.0, %v3767_v22 }
0x148d   :  { %3768 = vrcp.f32 %v1898_v25 }
0x1497   :  { %v3769_v26 = vpop.eup %3768 }
0x1498   :  { %v1912_v35 = vsub.f32 1.0, %v3769_v26  ;;  %v1918_v23 = vmul.f32 %v3769_v26, %v1816_v12 }
0x14ee   :  { %v1903_v27 = vpop.permute.xlu0 %1902 }
0x14ef   :  { %v1905_v30 = vmul.f32 %v3769_v26, %v1903_v27 }
0x14f1   :  { %1907 = vrot.lane.b32.xlu1 %v1905_v30, %s3886_s23 }
0x1563   :  { %v1908_v31 = vpop.permute.xlu1 %1907 }
0x1564   :  { %v1910_v32 = vadd.f32 %v1908_v31, %v4216_v43 }
0x1566   :  { %3770 = vtanh.f32 %v1910_v32 }
0x1570   :  { %v3771_v33 = vpop.eup %3770 }
0x1571   :  { %1914 = vrot.lane.b32.xlu0 %v3771_v33, %s3891_s0 }
0x15e3   :  { %v1915_v21 = vpop.permute.xlu0 %1914 }
0x15e4   :  { %v1917_v29 = vmul.f32 %v1915_v21, %v1912_v35 }
0x15e6   :  { %v1919_v36 = vadd.f32 %v1918_v23, %v1917_v29 }
0x15e8   :  { %1921 = vrot.lane.b32.xlu1 %v1919_v36, %s3891_s0 }
0x165a   :  { %v1922_v37 = vpop.permute.xlu1 %1921 }
0x165b   :  { %1924 = vst.msk [vmem:[#allocation2 + $0xa] sm:$0x3] %vm1134_vm0, %v1922_v37  ;;  %3456 = vmatmul.mubr.msk.f32.vlgmr.msra.gmra.mrb[8].mxu0 %vm962_vm7, %v1922_v37 }
0x165c   :  { %3661 = vmatpush3.bf16.msra.mxu0 %v4172_v14  ;;  %3477 = vmatprep.mubr.msk.f32.mxu0 %vm3880_vm5, %v3879_v42 }
0x165d   :  { %3662 = vmatprep.subr.bf16.mxu0 %v3878_v44 }
0x1660   :  { %3664 = vmatpush3.bf16.msra.mxu0 %v4176_v16 }
0x1661   :  { %3671 = vmatprep.subr.bf16.mxu0 %v3878_v44 }
0x172e   :  { %v1993_v38 = vpop.f32.mrb[8].mxu0 }
0x172f   :  { %v1994_v39 = vadd.f32 %v4199_v34, %v1993_v38  ;;  %v3457_v40 = vpop.f32.mrb[9].mxu0 }
0x1731   :  { %2005 = vrot.lane.b32.xlu0 %v1994_v39, %s3886_s23  ;;  %v1997_v41 = vadd.f32 %v1994_v39, %v4216_v43 }
0x1733   :  { %v3147_v45 = vmul.f32 -1.442695, %v1997_v41 }
0x1735   :  { %3772 = vpow2.f32 %v3147_v45 }
0x173f   :  { %v3773_v46 = vpop.eup %3772 }
0x1740   :  { %v2001_v47 = vadd.f32 1.0, %v3773_v46 }
0x1742   :  { %3774 = vrcp.f32 %v2001_v47 }
0x174c   :  { %v3775_v24 = vpop.eup %3774 }
0x174d   :  { %v2015_v52 = vsub.f32 1.0, %v3775_v24  ;;  %v2021_v55 = vmul.f32 %v3775_v24, %v1919_v36 }
0x17a3   :  { %v2006_v48 = vpop.permute.xlu0 %2005 }
0x17a4   :  { %v2008_v49 = vmul.f32 %v3775_v24, %v2006_v48 }
0x17a6   :  { %2010 = vrot.lane.b32.xlu1 %v2008_v49, %s3886_s23 }
0x1818   :  { %v2011_v50 = vpop.permute.xlu1 %2010 }
0x1819   :  { %v2013_v53 = vadd.f32 %v2011_v50, %v4216_v43 }
0x181b   :  { %3776 = vtanh.f32 %v2013_v53 }
0x1825   :  { %v3777_v51 = vpop.eup %3776 }
0x1826   :  { %2017 = vrot.lane.b32.xlu0 %v3777_v51, %s3891_s0 }
0x1898   :  { %v2018_v54 = vpop.permute.xlu0 %2017 }
0x1899   :  { %v2020_v56 = vmul.f32 %v2018_v54, %v2015_v52 }
0x189b   :  { %v2022_v57 = vadd.f32 %v2021_v55, %v2020_v56 }
0x189d   :  { %2024 = vrot.lane.b32.xlu1 %v2022_v57, %s3891_s0 }
0x190f   :  { %v2025_v58 = vpop.permute.xlu1 %2024 }
0x1910   :  { %2027 = vst.msk [vmem:[#allocation2 + $0xc] sm:$0x3] %vm1134_vm0, %v2025_v58  ;;  %3467 = vmatmul.mubr.msk.f32.vlgmr.msra.gmra.mrb[22].mxu1 %vm962_vm7, %v2025_v58 }
0x1911   :  { %3667 = vmatpush3.bf16.msra.mxu1 %v4172_v14  ;;  %3488 = vmatprep.mubr.msk.f32.mxu1 %vm3880_vm5, %v3879_v42 }
0x1912   :  { %3668 = vmatprep.subr.bf16.mxu1 %v3878_v44 }
0x1915   :  { %3670 = vmatpush3.bf16.msra.mxu1 %v4176_v16 }
0x1916   :  { %3677 = vmatprep.subr.bf16.mxu1 %v3878_v44 }
0x19e3   :  { %v2096_v59 = vpop.f32.mrb[22].mxu1 }
0x19e4   :  { %v2097_v60 = vadd.f32 %v4199_v34, %v2096_v59  ;;  %v3468_v61 = vpop.f32.mrb[23].mxu1 }
0x19e6   :  { %2108 = vrot.lane.b32.xlu0 %v2097_v60, %s3886_s23  ;;  %v2100_v62 = vadd.f32 %v2097_v60, %v4216_v43 }
0x19e8   :  { %v3149_v63 = vmul.f32 -1.442695, %v2100_v62 }
0x19ea   :  { %3778 = vpow2.f32 %v3149_v63 }
0x19f4   :  { %v3779_v0 = vpop.eup %3778 }
0x19f5   :  { %v2104_v1 = vadd.f32 1.0, %v3779_v0 }
0x19f7   :  { %3780 = vrcp.f32 %v2104_v1 }
0x1a01   :  { %v3781_v28 = vpop.eup %3780 }
0x1a02   :  { %v2118_v8 = vsub.f32 1.0, %v3781_v28  ;;  %v2124_v10 = vmul.f32 %v3781_v28, %v2022_v57 }
0x1a58   :  { %v2109_v2 = vpop.permute.xlu0 %2108 }
0x1a59   :  { %v2111_v4 = vmul.f32 %v3781_v28, %v2109_v2 }
0x1a5b   :  { %2113 = vrot.lane.b32.xlu1 %v2111_v4, %s3886_s23 }
0x1acd   :  { %v2114_v5 = vpop.permute.xlu1 %2113 }
0x1ace   :  { %v2116_v6 = vadd.f32 %v2114_v5, %v4216_v43 }
0x1ad0   :  { %3782 = vtanh.f32 %v2116_v6 }
0x1ada   :  { %v3783_v7 = vpop.eup %3782 }
0x1adb   :  { %2120 = vrot.lane.b32.xlu0 %v3783_v7, %s3891_s0 }
0x1b4d   :  { %v2121_v9 = vpop.permute.xlu0 %2120 }
0x1b4e   :  { %v2123_v3 = vmul.f32 %v2121_v9, %v2118_v8 }
0x1b50   :  { %v2125_v11 = vadd.f32 %v2124_v10, %v2123_v3 }
0x1b52   :  { %2127 = vrot.lane.b32.xlu1 %v2125_v11, %s3891_s0 }
0x1bc4   :  { %v2128_v12 = vpop.permute.xlu1 %2127 }
0x1bc5   :  { %2130 = vst.msk [vmem:[#allocation2 + $0xe] sm:$0x3] %vm1134_vm0, %v2128_v12  ;;  %3478 = vmatmul.mubr.msk.f32.vlgmr.msra.gmra.mrb[10].mxu0 %vm962_vm7, %v2128_v12 }
0x1bc6   :  { %3673 = vmatpush3.bf16.msra.mxu0 %v4172_v14  ;;  %3499 = vmatprep.mubr.msk.f32.mxu0 %vm3880_vm5, %v3879_v42 }
0x1bc7   :  { %3674 = vmatprep.subr.bf16.mxu0 %v3878_v44 }
0x1bca   :  { %3676 = vmatpush3.bf16.msra.mxu0 %v4176_v16 }
0x1bcb   :  { %3683 = vmatprep.subr.bf16.mxu0 %v3878_v44 }
0x1c98   :  { %v2199_v13 = vpop.f32.mrb[10].mxu0 }
0x1c99   :  { %v2200_v15 = vadd.f32 %v4199_v34, %v2199_v13  ;;  %v3479_v17 = vpop.f32.mrb[11].mxu0 }
0x1c9b   :  { %2211 = vrot.lane.b32.xlu0 %v2200_v15, %s3886_s23  ;;  %v2203_v18 = vadd.f32 %v2200_v15, %v4216_v43 }
0x1c9d   :  { %v3151_v19 = vmul.f32 -1.442695, %v2203_v18 }
0x1c9f   :  { %3784 = vpow2.f32 %v3151_v19 }
0x1ca9   :  { %v3785_v20 = vpop.eup %3784 }
0x1caa   :  { %v2207_v22 = vadd.f32 1.0, %v3785_v20 }
0x1cac   :  { %3786 = vrcp.f32 %v2207_v22 }
0x1cb6   :  { %v3787_v25 = vpop.eup %3786 }
0x1cb7   :  { %v2221_v33 = vsub.f32 1.0, %v3787_v25  ;;  %v2227_v21 = vmul.f32 %v3787_v25, %v2125_v11 }
0x1d0d   :  { %v2212_v26 = vpop.permute.xlu0 %2211 }
0x1d0e   :  { %v2214_v27 = vmul.f32 %v3787_v25, %v2212_v26 }
0x1d10   :  { %2216 = vrot.lane.b32.xlu1 %v2214_v27, %s3886_s23 }
0x1d82   :  { %v2217_v30 = vpop.permute.xlu1 %2216 }
0x1d83   :  { %v2219_v31 = vadd.f32 %v2217_v30, %v4216_v43 }
0x1d85   :  { %3788 = vtanh.f32 %v2219_v31 }
0x1d8f   :  { %v3789_v32 = vpop.eup %3788 }
0x1d90   :  { %2223 = vrot.lane.b32.xlu0 %v3789_v32, %s3891_s0 }
0x1e02   :  { %v2224_v35 = vpop.permute.xlu0 %2223 }
0x1e03   :  { %v2226_v23 = vmul.f32 %v2224_v35, %v2221_v33 }
0x1e05   :  { %v2228_v29 = vadd.f32 %v2227_v21, %v2226_v23 }
0x1e07   :  { %2230 = vrot.lane.b32.xlu1 %v2228_v29, %s3891_s0 }
0x1e79   :  { %v2231_v36 = vpop.permute.xlu1 %2230 }
0x1e7a   :  { %2233 = vst.msk [vmem:[#allocation2 + $0x10] sm:$0x3] %vm1134_vm0, %v2231_v36  ;;  %3489 = vmatmul.mubr.msk.f32.vlgmr.msra.gmra.mrb[24].mxu1 %vm962_vm7, %v2231_v36 }
0x1e7b   :  { %3679 = vmatpush3.bf16.msra.mxu1 %v4172_v14  ;;  %3510 = vmatprep.mubr.msk.f32.mxu1 %vm3880_vm5, %v3879_v42 }
0x1e7c   :  { %3680 = vmatprep.subr.bf16.mxu1 %v3878_v44 }
0x1e7f   :  { %3682 = vmatpush3.bf16.msra.mxu1 %v4176_v16 }
0x1e80   :  { %3689 = vmatprep.subr.bf16.mxu1 %v3878_v44 }
0x1f4d   :  { %v2302_v37 = vpop.f32.mrb[24].mxu1 }
0x1f4e   :  { %v2303_v38 = vadd.f32 %v4199_v34, %v2302_v37  ;;  %v3490_v39 = vpop.f32.mrb[25].mxu1 }
0x1f50   :  { %2314 = vrot.lane.b32.xlu0 %v2303_v38, %s3886_s23  ;;  %v2306_v40 = vadd.f32 %v2303_v38, %v4216_v43 }
0x1f52   :  { %v3153_v41 = vmul.f32 -1.442695, %v2306_v40 }
0x1f54   :  { %3790 = vpow2.f32 %v3153_v41 }
0x1f5e   :  { %v3791_v45 = vpop.eup %3790 }
0x1f5f   :  { %v2310_v46 = vadd.f32 1.0, %v3791_v45 }
0x1f61   :  { %3792 = vrcp.f32 %v2310_v46 }
0x1f6b   :  { %v3793_v47 = vpop.eup %3792 }
0x1f6c   :  { %v2324_v51 = vsub.f32 1.0, %v3793_v47  ;;  %v2330_v54 = vmul.f32 %v3793_v47, %v2228_v29 }
0x1fc2   :  { %v2315_v24 = vpop.permute.xlu0 %2314 }
0x1fc3   :  { %v2317_v48 = vmul.f32 %v3793_v47, %v2315_v24 }
0x1fc5   :  { %2319 = vrot.lane.b32.xlu1 %v2317_v48, %s3886_s23 }
0x2037   :  { %v2320_v49 = vpop.permute.xlu1 %2319 }
0x2038   :  { %v2322_v50 = vadd.f32 %v2320_v49, %v4216_v43 }
0x203a   :  { %3794 = vtanh.f32 %v2322_v50 }
0x2044   :  { %v3795_v53 = vpop.eup %3794 }
0x2045   :  { %2326 = vrot.lane.b32.xlu0 %v3795_v53, %s3891_s0 }
0x20b7   :  { %v2327_v52 = vpop.permute.xlu0 %2326 }
0x20b8   :  { %v2329_v55 = vmul.f32 %v2327_v52, %v2324_v51 }
0x20ba   :  { %v2331_v56 = vadd.f32 %v2330_v54, %v2329_v55 }
0x20bc   :  { %2333 = vrot.lane.b32.xlu1 %v2331_v56, %s3891_s0 }
0x212e   :  { %v2334_v57 = vpop.permute.xlu1 %2333 }
0x212f   :  { %2336 = vst.msk [vmem:[#allocation2 + $0x12] sm:$0x3] %vm1134_vm0, %v2334_v57  ;;  %3500 = vmatmul.mubr.msk.f32.vlgmr.msra.gmra.mrb[12].mxu0 %vm962_vm7, %v2334_v57 }
0x2130   :  { %3685 = vmatpush3.bf16.msra.mxu0 %v4172_v14  ;;  %3521 = vmatprep.mubr.msk.f32.mxu0 %vm3880_vm5, %v3879_v42 }
0x2131   :  { %3686 = vmatprep.subr.bf16.mxu0 %v3878_v44 }
0x2134   :  { %3688 = vmatpush3.bf16.msra.mxu0 %v4176_v16 }
0x2135   :  { %3695 = vmatprep.subr.bf16.mxu0 %v3878_v44 }
0x2202   :  { %v2405_v58 = vpop.f32.mrb[12].mxu0 }
0x2203   :  { %v2406_v59 = vadd.f32 %v4199_v34, %v2405_v58  ;;  %v3501_v60 = vpop.f32.mrb[13].mxu0 }
0x2205   :  { %2417 = vrot.lane.b32.xlu0 %v2406_v59, %s3886_s23  ;;  %v2409_v61 = vadd.f32 %v2406_v59, %v4216_v43 }
0x2207   :  { %v3155_v62 = vmul.f32 -1.442695, %v2409_v61 }
0x2209   :  { %3796 = vpow2.f32 %v3155_v62 }
0x2213   :  { %v3797_v63 = vpop.eup %3796 }
0x2214   :  { %v2413_v0 = vadd.f32 1.0, %v3797_v63 }
0x2216   :  { %3798 = vrcp.f32 %v2413_v0 }
0x2220   :  { %v3799_v1 = vpop.eup %3798 }
0x2221   :  { %v2427_v7 = vsub.f32 1.0, %v3799_v1  ;;  %v2433_v9 = vmul.f32 %v3799_v1, %v2331_v56 }
0x2277   :  { %v2418_v28 = vpop.permute.xlu0 %2417 }
0x2278   :  { %v2420_v2 = vmul.f32 %v3799_v1, %v2418_v28  ;;  %v65_v1 = vld [vmem:[#allocation3 + $0x100] sm:$0xff]  ;;  %v66_v28 = vld [vmem:[#allocation3 + $0x108] sm:$0xff] }
0x227a   :  { %2422 = vrot.lane.b32.xlu1 %v2420_v2, %s3886_s23  ;;  %v3707_v2 = vpack.c.bf16 %v66_v28, %v65_v1 }
0x22ec   :  { %v2423_v4 = vpop.permute.xlu1 %2422 }
0x22ed   :  { %v2425_v5 = vadd.f32 %v2423_v4, %v4216_v43 }
0x22ef   :  { %3800 = vtanh.f32 %v2425_v5 }
0x22f9   :  { %v3801_v6 = vpop.eup %3800 }
0x22fa   :  { %2429 = vrot.lane.b32.xlu0 %v3801_v6, %s3891_s0 }
0x236c   :  { %v2430_v8 = vpop.permute.xlu0 %2429 }
0x236d   :  { %v2432_v10 = vmul.f32 %v2430_v8, %v2427_v7 }
0x236f   :  { %v2434_v3 = vadd.f32 %v2433_v9, %v2432_v10  ;;  %v67_v10 = vld [vmem:[#allocation3 + $0x110] sm:$0xff] }
0x2371   :  { %2436 = vrot.lane.b32.xlu1 %v2434_v3, %s3891_s0 }
0x23e3   :  { %v2437_v11 = vpop.permute.xlu1 %2436 }
0x23e4   :  { %2439 = vst.msk [vmem:[#allocation2 + $0x14] sm:$0x3] %vm1134_vm0, %v2437_v11  ;;  %3511 = vmatmul.mubr.msk.f32.vlgmr.msra.gmra.mrb[26].mxu1 %vm962_vm7, %v2437_v11 }
0x23e5   :  { %3691 = vmatpush3.bf16.msra.mxu1 %v4172_v14  ;;  %3532 = vmatprep.mubr.msk.f32.mxu1 %vm3880_vm5, %v3879_v42 }
0x23e6   :  { %3692 = vmatprep.subr.bf16.mxu1 %v3878_v44 }
0x23e9   :  { %3694 = vmatpush3.bf16.msra.mxu1 %v4176_v16 }
0x23ea   :  { %3701 = vmatprep.subr.bf16.mxu1 %v3878_v44 }
0x24b7   :  { %v2508_v12 = vpop.f32.mrb[26].mxu1 }
0x24b8   :  { %v2509_v13 = vadd.f32 %v4199_v34, %v2508_v12  ;;  %v3512_v15 = vpop.f32.mrb[27].mxu1 }
0x24b9   :  { %v2956_v15 = vld [vmem:[#allocation2 + $0x8] sm:$0xff] }
0x24ba   :  { %2520 = vrot.lane.b32.xlu0 %v2509_v13, %s3886_s23  ;;  %v2512_v17 = vadd.f32 %v2509_v13, %v4216_v43  ;;  %v2955_v13 = vld [vmem:[#allocation2] sm:$0xff] }
0x24bc   :  { %v3157_v18 = vmul.f32 -1.442695, %v2512_v17 }
0x24be   :  { %3802 = vpow2.f32 %v3157_v18 }
0x24c8   :  { %v3803_v19 = vpop.eup %3802 }
0x24c9   :  { %v2516_v20 = vadd.f32 1.0, %v3803_v19 }
0x24cb   :  { %3804 = vrcp.f32 %v2516_v20 }
0x24d5   :  { %v3805_v22 = vpop.eup %3804 }
0x24d6   :  { %v2530_v32 = vsub.f32 1.0, %v3805_v22  ;;  %v2536_v35 = vmul.f32 %v3805_v22, %v2434_v3  ;;  %v68_v3 = vld [vmem:[#allocation3 + $0x118] sm:$0xff] }
0x24d7   :  { %v3711_v11 = vpack.c.bf16 %v68_v3, %v67_v10 }
0x252c   :  { %v2521_v25 = vpop.permute.xlu0 %2520 }
0x252d   :  { %v2523_v26 = vmul.f32 %v3805_v22, %v2521_v25 }
0x252f   :  { %2525 = vrot.lane.b32.xlu1 %v2523_v26, %s3886_s23 }
0x25a1   :  { %v2526_v27 = vpop.permute.xlu1 %2525 }
0x25a2   :  { %v2528_v30 = vadd.f32 %v2526_v27, %v4216_v43 }
0x25a4   :  { %3806 = vtanh.f32 %v2528_v30 }
0x25ae   :  { %v3807_v31 = vpop.eup %3806 }
0x25af   :  { %2532 = vrot.lane.b32.xlu0 %v3807_v31, %s3891_s0 }
0x2621   :  { %v2533_v33 = vpop.permute.xlu0 %2532 }
0x2622   :  { %v2535_v21 = vmul.f32 %v2533_v33, %v2530_v32 }
0x2624   :  { %v2537_v23 = vadd.f32 %v2536_v35, %v2535_v21 }
0x2626   :  { %2539 = vrot.lane.b32.xlu1 %v2537_v23, %s3891_s0 }
0x2698   :  { %v2540_v29 = vpop.permute.xlu1 %2539 }
0x2699   :  { %2542 = vst.msk [vmem:[#allocation2 + $0x16] sm:$0x3] %vm1134_vm0, %v2540_v29  ;;  %3522 = vmatmul.mubr.msk.f32.vlgmr.msra.gmra.mrb[14].mxu0 %vm962_vm7, %v2540_v29 }
0x269a   :  { %3697 = vmatpush3.bf16.msra.mxu0 %v4172_v14  ;;  %3543 = vmatprep.mubr.msk.f32.mxu0 %vm3880_vm5, %v3879_v42 }
0x269b   :  { %3698 = vmatprep.subr.bf16.mxu0 %v3878_v44 }
0x269e   :  { %3700 = vmatpush3.bf16.msra.mxu0 %v4176_v16 }
0x269f   :  { %3708 = vmatprep.subr.bf16.mxu0 %v3707_v2 }
0x26a0   :  { %v2957_v17 = vld [vmem:[#allocation2 + $0x10] sm:$0xff] }
0x276c   :  { %v2611_v36 = vpop.f32.mrb[14].mxu0 }
0x276d   :  { %v2612_v37 = vadd.f32 %v4199_v34, %v2611_v36  ;;  %v3523_v38 = vpop.f32.mrb[15].mxu0 }
0x276f   :  { %2623 = vrot.lane.b32.xlu0 %v2612_v37, %s3886_s23  ;;  %v2615_v39 = vadd.f32 %v2612_v37, %v4216_v43 }
0x2771   :  { %v3159_v40 = vmul.f32 -1.442695, %v2615_v39 }
0x2773   :  { %3808 = vpow2.f32 %v3159_v40 }
0x277d   :  { %v3809_v41 = vpop.eup %3808 }
0x277e   :  { %v2619_v45 = vadd.f32 1.0, %v3809_v41 }
0x2780   :  { %3810 = vrcp.f32 %v2619_v45  ;;  %v3848_v45 = vld [vmem:[%s4471_s3 + $0x6] ss:$0 sm:$0xff] }
0x278a   :  { %v3811_v46 = vpop.eup %3810 }
0x278b   :  { %v2633_v53 = vsub.f32 1.0, %v3811_v46  ;;  %v2639_v52 = vmul.f32 %v3811_v46, %v2537_v23 }
0x27e1   :  { %v2624_v47 = vpop.permute.xlu0 %2623 }
0x27e2   :  { %v2626_v24 = vmul.f32 %v3811_v46, %v2624_v47 }
0x27e4   :  { %2628 = vrot.lane.b32.xlu1 %v2626_v24, %s3886_s23 }
0x2856   :  { %v2629_v48 = vpop.permute.xlu1 %2628 }
0x2857   :  { %v2631_v49 = vadd.f32 %v2629_v48, %v4216_v43 }
0x2859   :  { %3812 = vtanh.f32 %v2631_v49 }
0x2863   :  { %v3813_v50 = vpop.eup %3812 }
0x2864   :  { %2635 = vrot.lane.b32.xlu0 %v3813_v50, %s3891_s0 }
0x28d6   :  { %v2636_v51 = vpop.permute.xlu0 %2635 }
0x28d7   :  { %v2638_v54 = vmul.f32 %v2636_v51, %v2633_v53 }
0x28d9   :  { %v2640_v55 = vadd.f32 %v2639_v52, %v2638_v54 }
0x28db   :  { %2642 = vrot.lane.b32.xlu1 %v2640_v55, %s3891_s0 }
0x294d   :  { %v2643_v56 = vpop.permute.xlu1 %2642 }
0x294e   :  { %2645 = vst.msk [vmem:[#allocation2 + $0x18] sm:$0x3] %vm1134_vm0, %v2643_v56  ;;  %3533 = vmatmul.mubr.msk.f32.vlgmr.msra.gmra.mrb[28].mxu1 %vm962_vm7, %v2643_v56 }
0x294f   :  { %3703 = vmatpush3.bf16.msra.mxu1 %v4172_v14  ;;  %3554 = vmatprep.mubr.msk.f32.mxu1 %vm3880_vm5, %v3879_v42 }
0x2950   :  { %3704 = vmatprep.subr.bf16.mxu1 %v3878_v44 }
0x2953   :  { %3706 = vmatpush3.bf16.msra.mxu1 %v4176_v16 }
0x2a21   :  { %v2714_v57 = vpop.f32.mrb[28].mxu1 }
0x2a22   :  { %v2715_v58 = vadd.f32 %v4199_v34, %v2714_v57  ;;  %v3534_v59 = vpop.f32.mrb[29].mxu1  ;;  %v3166_v57 = vld [vmem:[%s4471_s3 + $0x7] ss:$0 sm:$0xff] }
0x2a24   :  { %2726 = vrot.lane.b32.xlu0 %v2715_v58, %s3886_s23  ;;  %v2718_v60 = vadd.f32 %v2715_v58, %v4216_v43 }
0x2a26   :  { %v3161_v61 = vmul.f32 -1.442695, %v2718_v60 }
0x2a28   :  { %3814 = vpow2.f32 %v3161_v61 }
0x2a32   :  { %v3815_v62 = vpop.eup %3814 }
0x2a33   :  { %v2722_v63 = vadd.f32 1.0, %v3815_v62 }
0x2a35   :  { %3816 = vrcp.f32 %v2722_v63 }
0x2a3f   :  { %v3817_v14 = vpop.eup %3816 }
0x2a40   :  { %v2736_v5 = vsub.f32 1.0, %v3817_v14  ;;  %v2742_v7 = vmul.f32 %v3817_v14, %v2640_v55 }
0x2a96   :  { %v2727_v0 = vpop.permute.xlu0 %2726 }
0x2a97   :  { %v2729_v42 = vmul.f32 %v3817_v14, %v2727_v0 }
0x2a99   :  { %2731 = vrot.lane.b32.xlu1 %v2729_v42, %s3886_s23 }
0x2b0b   :  { %v2732_v44 = vpop.permute.xlu1 %2731 }
0x2b0c   :  { %v2734_v16 = vadd.f32 %v2732_v44, %v4216_v43 }
0x2b0e   :  { %3818 = vtanh.f32 %v2734_v16 }
0x2b18   :  { %v3819_v4 = vpop.eup %3818 }
0x2b19   :  { %2738 = vrot.lane.b32.xlu0 %v3819_v4, %s3891_s0 }
0x2b8b   :  { %v2739_v6 = vpop.permute.xlu0 %2738 }
0x2b8c   :  { %v2741_v8 = vmul.f32 %v2739_v6, %v2736_v5 }
0x2b8e   :  { %v2743_v9 = vadd.f32 %v2742_v7, %v2741_v8 }
0x2b90   :  { %2745 = vrot.lane.b32.xlu1 %v2743_v9, %s3891_s0 }
0x2c02   :  { %v2746_v12 = vpop.permute.xlu1 %2745 }
0x2c03   :  { %2748 = vst.msk [vmem:[#allocation2 + $0x1a] sm:$0x3] %vm1134_vm0, %v2746_v12  ;;  %3544 = vmatmul.mubr.msk.f32.vlgmr.msra.gmra.mrb[16].mxu0 %vm962_vm7, %v2746_v12 }
0x2c04   :  { %3710 = vmatpush3.bf16.msra.mxu0 %v3707_v2  ;;  %3565 = vmatprep.mubr.msk.f32.mxu0 %vm962_vm7, %v2955_v13 }
0x2c05   :  { %3712 = vmatprep.subr.bf16.mxu0 %v3711_v11 }
0x2c08   :  { %3714 = vmatpush3.bf16.msra.mxu0 %v3711_v11 }
0x2c0b   :  { %3566 = vmatmul.mubr.msk.f32.vlgmr.msra.gmra.mrb[18].mxu0 %vm962_vm7, %v2956_v15 }
0x2c0c   :  { %3568 = vmatprep.mubr.msk.f32.mxu0 %vm962_vm7, %v2957_v17 }
0x2cd6   :  { %v2817_v18 = vpop.f32.mrb[16].mxu0 }
0x2cd7   :  { %v2818_v19 = vadd.f32 %v4199_v34, %v2817_v18  ;;  %v3545_v20 = vpop.f32.mrb[17].mxu0 }
0x2cd9   :  { %2829 = vrot.lane.b32.xlu0 %v2818_v19, %s3886_s23  ;;  %v2821_v26 = vadd.f32 %v2818_v19, %v4216_v43 }
0x2cdb   :  { %v3163_v27 = vmul.f32 -1.442695, %v2821_v26 }
0x2cdd   :  { %3820 = vpow2.f32 %v3163_v27 }
0x2cde   :  { %v3567_v22 = vpop.f32.mrb[18].mxu0 }
0x2cdf   :  { %v3041_v25 = vpop.f32.mrb[19].mxu0 }
0x2ce0   :  { %v3042_v58 = vadd.f32 %v3166_v57, %v3041_v25 }
0x2ce2   :  { %v3060_v59 = vsel %vm123_vm2, %v3042_v58, -inf }
0x2ce7   :  { %v3821_v30 = vpop.eup %3820 }
0x2ce8   :  { %v2825_v31 = vadd.f32 1.0, %v3821_v30 }
0x2cea   :  { %3822 = vrcp.f32 %v2825_v31 }
0x2cf4   :  { %v3823_v32 = vpop.eup %3822 }
0x2cf5   :  { %v2839_v29 = vsub.f32 1.0, %v3823_v32  ;;  %v2845_v37 = vmul.f32 %v3823_v32, %v2743_v9 }
0x2d4b   :  { %v2830_v33 = vpop.permute.xlu0 %2829 }
0x2d4c   :  { %v2832_v35 = vmul.f32 %v3823_v32, %v2830_v33 }
0x2d4e   :  { %2834 = vrot.lane.b32.xlu1 %v2832_v35, %s3886_s23 }
0x2dc0   :  { %v2835_v21 = vpop.permute.xlu1 %2834 }
0x2dc1   :  { %v2837_v34 = vadd.f32 %v2835_v21, %v4216_v43 }
0x2dc3   :  { %3824 = vtanh.f32 %v2837_v34 }
0x2dcd   :  { %v3825_v23 = vpop.eup %3824 }
0x2dce   :  { %2841 = vrot.lane.b32.xlu0 %v3825_v23, %s3891_s0 }
0x2e40   :  { %v2842_v36 = vpop.permute.xlu0 %2841 }
0x2e41   :  { %v2844_v38 = vmul.f32 %v2842_v36, %v2839_v29 }
0x2e43   :  { %v2846_v39 = vadd.f32 %v2845_v37, %v2844_v38 }
0x2e45   :  { %2848 = vrot.lane.b32.xlu1 %v2846_v39, %s3891_s0 }
0x2eb7   :  { %v2849_v40 = vpop.permute.xlu1 %2848 }
0x2eb8   :  { %2851 = vst.msk [vmem:[#allocation2 + $0x1c] sm:$0x3] %vm1134_vm0, %v2849_v40  ;;  %3555 = vmatmul.mubr.msk.f32.vlgmr.msra.gmra.mrb[30].mxu1 %vm962_vm7, %v2849_v40 }
0x2f8b   :  { %v2920_v41 = vpop.f32.mrb[30].mxu1 }
0x2f8c   :  { %v2921_v46 = vadd.f32 %v3848_v45, %v2920_v41  ;;  %v3556_v47 = vpop.f32.mrb[31].mxu1 }
0x2f8e   :  { %2932 = vrot.lane.b32.xlu0 %v2921_v46, %s3886_s23  ;;  %v2924_v24 = vadd.f32 %v2921_v46, %v4216_v43 }
0x2f90   :  { %v3165_v48 = vmul.f32 -1.442695, %v2924_v24 }
0x2f92   :  { %3826 = vpow2.f32 %v3165_v48 }
0x2f9c   :  { %v3827_v49 = vpop.eup %3826 }
0x2f9d   :  { %v2928_v50 = vadd.f32 1.0, %v3827_v49 }
0x2f9f   :  { %3828 = vrcp.f32 %v2928_v50 }
0x2fa9   :  { %v3829_v53 = vpop.eup %3828 }
0x2faa   :  { %v2942_v60 = vsub.f32 1.0, %v3829_v53  ;;  %v2948_v62 = vmul.f32 %v3829_v53, %v2846_v39 }
0x3000   :  { %v2933_v51 = vpop.permute.xlu0 %2932 }
0x3001   :  { %v2935_v52 = vmul.f32 %v3829_v53, %v2933_v51 }
0x3003   :  { %2937 = vrot.lane.b32.xlu1 %v2935_v52, %s3886_s23 }
0x3075   :  { %v2938_v54 = vpop.permute.xlu1 %2937 }
0x3076   :  { %v2940_v55 = vadd.f32 %v2938_v54, %v4216_v43  ;;  %v3047_v43 = vadd.f32 %v3567_v22, %v3166_v57 }
0x3078   :  { %3830 = vtanh.f32 %v2940_v55  ;;  %v3063_v0 = vsel %vm123_vm2, %v3047_v43, -inf }
0x3082   :  { %v3831_v56 = vpop.eup %3830 }
0x3083   :  { %2944 = vrot.lane.b32.xlu0 %v3831_v56, %s3891_s0 }
0x30a2   :  { %3061 = vmax.xlane.f32.xlu0 %v3060_v59 }
0x30f5   :  { %v2945_v61 = vpop.permute.xlu0 %2944 }
0x30f6   :  { %v2947_v63 = vmul.f32 %v2945_v61, %v2942_v60 }
0x30f8   :  { %v2949_v14 = vadd.f32 %v2948_v62, %v2947_v63 }
0x30fa   :  { %2951 = vrot.lane.b32.xlu1 %v2949_v14, %s3891_s0 }
0x311e   :  { %3064 = vmax.xlane.f32.xlu1 %v3063_v0 }
0x312f   :  { %v3062_v42 = vpop.xlane.xlu0 %3061 }
0x3130   :  { %v3072_v44 = vsub.f32 %v3042_v58, %v3062_v42 }
0x3132   :  { %v3076_v16 = vmul.f32 1.442695, %v3072_v44 }
0x3134   :  { %3832 = vpow2.f32 %v3076_v16 }
0x313e   :  { %v3833_v1 = vpop.eup %3832 }
0x313f   :  { %v3084_v28 = vsel %vm123_vm2, %v3833_v1, 0.0 }
0x3140   :  { %3085 = vadd.xlane.f32.xlu1 %v3084_v28 }
0x316c   :  { %v2952_v2 = vpop.permute.xlu1 %2951 }
0x316d   :  { %2954 = vst.msk [vmem:[#allocation2 + $0x1e] sm:$0x3] %vm1134_vm0, %v2952_v2 }
0x3174   :  { %v2958_v4 = vld [vmem:[#allocation2 + $0x18] sm:$0xff] }
0x3175   :  { %3569 = vmatmul.mubr.msk.f32.gmra.mrb[20].mxu0 %vm962_vm7, %v2958_v4 }
0x31ab   :  { %v3065_v5 = vpop.xlane.xlu1 %3064 }
0x31ac   :  { %v3073_v9 = vsub.f32 %v3047_v43, %v3065_v5 }
0x31ae   :  { %v3078_v10 = vmul.f32 1.442695, %v3073_v9 }
0x31cd   :  { %v3086_v6 = vpop.xlane.xlu1 %3085 }
0x31ce   :  { %3834 = vrcp.f32 %v3086_v6 }
0x31cf   :  { %3836 = vpow2.f32 %v3078_v10 }
0x31d8   :  { %v3835_v7 = vpop.eup %3834 }
0x31d9   :  { %v3097_v8 = vmul.f32 %v3835_v7, %v3833_v1  ;;  %v3837_v18 = vpop.eup %3836 }
0x31da   :  { %v3087_v19 = vsel %vm123_vm2, %v3837_v18, 0.0 }
0x31db   :  { %3104 = vst.msk [vmem:[%s4472_s4] sm:$0xff] %vm123_vm2, %v3097_v8 }
0x3248   :  { %v3570_v3 = vpop.f32.mrb[20].mxu0 }
0x3249   :  { %v3051_v11 = vpop.f32.mrb[21].mxu0  ;;  %v3057_v13 = vadd.f32 %v3570_v3, %v3166_v57 }
0x324a   :  { %v3052_v12 = vadd.f32 %v3166_v57, %v3051_v11 }
0x324b   :  { %v3069_v17 = vsel %vm123_vm2, %v3057_v13, -inf }
0x324c   :  { %v3066_v15 = vsel %vm123_vm2, %v3052_v12, -inf }
0x324d   :  { %3067 = vmax.xlane.f32.xlu0 %v3066_v15 }
0x3251   :  { %3070 = vmax.xlane.f32.xlu0 %v3069_v17 }
0x3255   :  { %3088 = vadd.xlane.f32.xlu0 %v3087_v19 }
0x32da   :  { %v3068_v20 = vpop.xlane.xlu0 %3067 }
0x32db   :  { %v3074_v22 = vsub.f32 %v3052_v12, %v3068_v20 }
0x32dd   :  { %v3080_v25 = vmul.f32 1.442695, %v3074_v22 }
0x32de   :  { %v3071_v26 = vpop.xlane.xlu0 %3070 }
0x32df   :  { %3838 = vpow2.f32 %v3080_v25  ;;  %v3075_v27 = vsub.f32 %v3057_v13, %v3071_v26 }
0x32e1   :  { %v3082_v30 = vmul.f32 1.442695, %v3075_v27 }
0x32e2   :  { %v3089_v31 = vpop.xlane.xlu0 %3088 }
0x32e3   :  { %3840 = vpow2.f32 %v3082_v30 }
0x32e4   :  { %3842 = vrcp.f32 %v3089_v31 }
0x32e9   :  { %v3839_v32 = vpop.eup %3838 }
0x32ea   :  { %v3090_v33 = vsel %vm123_vm2, %v3839_v32, 0.0 }
0x32eb   :  { %3091 = vadd.xlane.f32.xlu1 %v3090_v33 }
0x32ed   :  { %v3841_v35 = vpop.eup %3840 }
0x32ee   :  { %v3843_v21 = vpop.eup %3842  ;;  %v3093_v34 = vsel %vm123_vm2, %v3841_v35, 0.0 }
0x32ef   :  { %v3099_v23 = vmul.f32 %v3843_v21, %v3837_v18  ;;  %3094 = vadd.xlane.f32.xlu0 %v3093_v34 }
0x32f1   :  { %3105 = vst.msk [vmem:[%s4472_s4 + $0x8] sm:$0xff] %vm123_vm2, %v3099_v23 }
0x3378   :  { %v3092_v29 = vpop.xlane.xlu1 %3091 }
0x3379   :  { %3844 = vrcp.f32 %v3092_v29 }
0x337c   :  { %v3095_v36 = vpop.xlane.xlu0 %3094 }
0x337d   :  { %3846 = vrcp.f32 %v3095_v36 }
0x3383   :  { %v3845_v37 = vpop.eup %3844 }
0x3384   :  { %v3101_v38 = vmul.f32 %v3845_v37, %v3839_v32 }
0x3386   :  { %3106 = vst.msk [vmem:[%s4472_s4 + $0x10] sm:$0xff] %vm123_vm2, %v3101_v38 }
0x3387   :  { %v3847_v39 = vpop.eup %3846 }
0x3388   :  { %v3103_v40 = vmul.f32 %v3847_v39, %v3841_v35 }
0x338a   :  { %3107 = vst.msk [vmem:[%s4472_s4 + $0x18] sm:$0xff] %vm123_vm2, %v3103_v40 }
0x338b   :  { %3116 = vsyncpa [#allocation4], 1 }

</bundles_post_ra>
